<compile_context>
chip_gen: v7x
topology: tpu7x:2x2x1
jax: 0.10.0
libtpu: 0.0.40
codegen_flags: <defaults>
</compile_context>

<pallas_src>
import math
from functools import partial

import jax
import jax.numpy as jnp
from jax.experimental import pallas as pl
from jax.experimental.pallas import tpu as pltpu


def _mha_kernel(x_ref, wq_ref, wk_ref, wv_ref, wo_ref, o_ref, *, H, dim_head, S, m, Bt):
    """One grid step = Bt batch rows.

    x_ref:  (Bt, S, m)  input slab
    w*_ref: (m, m)      pre-transposed nn.Linear weights (y = x @ w_ref)
    o_ref:  (Bt, S, m)  output slab
    """
    scale = 1.0 / math.sqrt(dim_head)

    # Single big projection per weight: (Bt*S, m) @ (m, m).  The attention
    # scale is folded into Q once (Bt*S*m mults instead of per-head rescales).
    x = x_ref[...].reshape(Bt * S, m)
    Q = jnp.dot(x, wq_ref[...], preferred_element_type=jnp.float32) * scale
    K = jnp.dot(x, wk_ref[...], preferred_element_type=jnp.float32)
    V = jnp.dot(x, wv_ref[...], preferred_element_type=jnp.float32)

    ctx_rows = []
    for b in range(Bt):  # static unroll over the (small) per-step batch block
        r0 = b * S
        Qb, Kb, Vb = (t[r0:r0 + S] for t in (Q, K, V))  # (S, m) each

        # Head-major (H, S, dh) stacks built once per tensor.  Everything
        # below is then batched over all H heads at once (one softmax on
        # (H, S, S) instead of H tiny per-head softmaxes).
        Qh = jnp.stack([Qb[:, h * dim_head:(h + 1) * dim_head] for h in range(H)], 0)
        Kh = jnp.stack([Kb[:, h * dim_head:(h + 1) * dim_head] for h in range(H)], 0)
        Vh = jnp.stack([Vb[:, h * dim_head:(h + 1) * dim_head] for h in range(H)], 0)

        # Batched scores (contract last dims, batch over heads) + exact softmax.
        s = jnp.einsum('hqd,hkd->hqk', Qh, Kh, preferred_element_type=jnp.float32)
        s = s - jnp.max(s, axis=-1, keepdims=True)
        p = jnp.exp(s)
        p = p / jnp.sum(p, axis=-1, keepdims=True)  # exact (no approx reciprocal)

        ctx = jnp.einsum('hqk,hkd->hqd', p, Vh,
                         preferred_element_type=jnp.float32)       # (H, S, dh)

        # Re-interleave heads back into the model dim: (H, S, dh) -> (S, m)
        # via a lane-ordered concat (register-level; no masked VMEM stores).
        ctx_rows.append(jnp.concatenate([ctx[h] for h in range(H)], axis=-1))

    ctx_all = ctx_rows[0] if Bt == 1 else jnp.concatenate(ctx_rows, axis=0)  # (Bt*S, m)

    # Single output projection with contraction dim m (not H matmuls of K=dh).
    y = jnp.dot(ctx_all, wo_ref[...], preferred_element_type=jnp.float32)
    o_ref[...] = y.reshape(Bt, S, m).astype(o_ref.dtype)


def _pick_block_b(B, S, m, itemsize, target_bytes=1 << 20):
    """Largest divisor of B whose (Bt, S, m) slab stays under `target_bytes`,
    while keeping >= 2 grid steps (when B >= 2) so the batch axis can still be
    sharded across both v7x TensorCores."""
    best = 1
    for bt in range(1, B + 1):
        if B % bt:
            continue
        if B >= 2 and B // bt < 2:
            continue
        if bt * S * m * itemsize > target_bytes:
            continue
        best = bt
    return best


def _vmem_limit_bytes():
    """Generation-specific VMEM budget with ~25% headroom for compiler scratch
    (~48 MiB on v7x's 64 MiB, ~96 MiB on v5e/v6e's 128 MiB)."""
    try:
        cap = pltpu.get_tpu_info().vmem_capacity_bytes
    except Exception:
        cap = 64 << 20  # conservative (v7x-sized) fallback
    return int(min(cap * 3 // 4, 96 << 20))


def audio_temporal_mha(q, wq, wk, wv, wo, H, *, block_b=None, compute_dtype=None):
    """q: (B, S, m); w*: (m, m) nn.Linear weights (PyTorch convention y = x @ W.T).

    compute_dtype=jnp.bfloat16 halves input/weight HBM traffic and uses the
    bf16 MXU for the projections; accumulation and the softmax stay f32.
    """
    B, S, m = q.shape
    assert m % H == 0, "model dim must be divisible by number of heads"
    dim_head = m // H
    out_dtype = q.dtype

    if compute_dtype is not None:
        q = q.astype(compute_dtype)
        wq, wk, wv, wo = (w.astype(compute_dtype) for w in (wq, wk, wv, wo))

    # Hoist the weight transposes out of the grid loop entirely (done once by
    # XLA in the wrapper); the kernel then only ever does row-major dots.
    wq_t, wk_t, wv_t, wo_t = (jnp.transpose(w) for w in (wq, wk, wv, wo))

    if block_b is None:
        block_b = _pick_block_b(B, S, m, jnp.dtype(q.dtype).itemsize)
    assert B % block_b == 0, "batch must be divisible by the batch block"

    kernel = partial(_mha_kernel, H=H, dim_head=dim_head, S=S, m=m, Bt=block_b)
    x_spec = pl.BlockSpec((block_b, S, m), lambda b: (b, 0, 0))
    o_spec = pl.BlockSpec((block_b, S, m), lambda b: (b, 0, 0))

    def _run(single_buffer_weights):
        if single_buffer_weights:
            # Constant-index blocks never change -> one VMEM buffer is enough.
            w_spec = pl.BlockSpec((m, m), lambda b: (0, 0),
                                  pipeline_mode=pl.Buffered(1))
        else:
            w_spec = pl.BlockSpec((m, m), lambda b: (0, 0))
        return pl.pallas_call(
            kernel,
            out_shape=jax.ShapeDtypeStruct((B, S, m), out_dtype),
            grid_spec=pltpu.PrefetchScalarGridSpec(
                num_scalar_prefetch=0,
                grid=(B // block_b,),
                in_specs=[x_spec, w_spec, w_spec, w_spec, w_spec],
                out_specs=o_spec,
            ),
            compiler_params=pltpu.CompilerParams(
                dimension_semantics=("parallel",),
                vmem_limit_bytes=_vmem_limit_bytes(),
            ),
        )(q, wq_t, wk_t, wv_t, wo_t)

    try:
        return _run(single_buffer_weights=True)
    except Exception:
        # pipeline_mode=Buffered(1) unsupported on this JAX build; fall back to
        # default double-buffered weight blocks (identical results).
        return _run(single_buffer_weights=False)


def _reference(q, wq, wk, wv, wo, H):
    """Pure-JAX replica of the PyTorch forward for correctness checking."""
    B, S, m = q.shape
    dh = m // H
    Q = (q @ wq.T).reshape(B, S, H, dh).transpose(0, 2, 1, 3)
    K = (q @ wk.T).reshape(B, S, H, dh).transpose(0, 2, 1, 3)
    V = (q @ wv.T).reshape(B, S, H, dh).transpose(0, 2, 1, 3)
    s = (Q @ jnp.swapaxes(K, -1, -2)) / math.sqrt(dh)
    p = jax.nn.softmax(s, axis=-1)
    x = (p @ V).transpose(0, 2, 1, 3).reshape(B, S, m)
    return x @ wo.T


if __name__ == "__main__":
    # Small shapes consistent with the module: batch=2, seq=8, m=32, H=4.
    B, S, m, H = 2, 8, 32, 4

    key = jax.random.PRNGKey(0)
    kq, kw1, kw2, kw3, kw4 = jax.random.split(key, 5)

    q = jax.random.normal(kq, (B, S, m), dtype=jnp.float32)
    # Deterministic Linear-weight init (Kaiming-uniform-ish bound like PyTorch).
    bound = 1.0 / math.sqrt(m)
    wq = jax.random.uniform(kw1, (m, m), jnp.float32, -bound, bound)
    wk = jax.random.uniform(kw2, (m, m), jnp.float32, -bound, bound)
    wv = jax.random.uniform(kw3, (m, m), jnp.float32, -bound, bound)
    wo = jax.random.uniform(kw4, (m, m), jnp.float32, -bound, bound)

    ref = _reference(q, wq, wk, wv, wo, H)

    # f32 path: softmax is now exact; remaining tolerance only covers the
    # MXU multi-pass f32 matmul vs. the XLA reference dots.
    out = jax.block_until_ready(audio_temporal_mha(q, wq, wk, wv, wo, H))
    assert out.shape == (B, S, m)
    assert jnp.allclose(out, ref, atol=2e-3, rtol=2e-3), "f32 mismatch vs reference"

    # bf16 compute path (halved input/weight HBM bytes, bf16 MXU projections);
    # loose tolerance because q/weights are rounded to bf16 before the kernel.
    out_bf16 = jax.block_until_ready(
        audio_temporal_mha(q, wq, wk, wv, wo, H, compute_dtype=jnp.bfloat16))
    assert jnp.allclose(out_bf16, ref, atol=1e-1, rtol=1e-1), "bf16 mismatch vs reference"

    print("KERNEL_OK")
</pallas_src>

<mosaic_0001>
module attributes {stable_mosaic.version = 11 : i64} {
  func.func @_mha_kernel(%arg0: i32, %arg1: memref<1x8x32xf32, #tpu.memory_space<vmem>>, %arg2: memref<32x32xf32, #tpu.memory_space<vmem>>, %arg3: memref<32x32xf32, #tpu.memory_space<vmem>>, %arg4: memref<32x32xf32, #tpu.memory_space<vmem>>, %arg5: memref<32x32xf32, #tpu.memory_space<vmem>>, %arg6: memref<1x8x32xf32, #tpu.memory_space<vmem>>) attributes {dimension_semantics = [#tpu.dimension_semantics<parallel>], iteration_bounds = array<i64: 2>, scalar_prefetch = 0 : i64, scratch_operands = 0 : i64, tpu.core_type = #tpu.core_type<tc>, window_params = [{transform_indices = @transform_0, window_bounds = array<i64: 1, 8, 32>}, {pipeline_mode = #tpu.pipeline_mode<synchronous>, transform_indices = @transform_1, window_bounds = array<i64: 32, 32>}, {pipeline_mode = #tpu.pipeline_mode<synchronous>, transform_indices = @transform_2, window_bounds = array<i64: 32, 32>}, {pipeline_mode = #tpu.pipeline_mode<synchronous>, transform_indices = @transform_3, window_bounds = array<i64: 32, 32>}, {pipeline_mode = #tpu.pipeline_mode<synchronous>, transform_indices = @transform_4, window_bounds = array<i64: 32, 32>}, {transform_indices = @transform_5, window_bounds = array<i64: 1, 8, 32>}]} {
    %c0 = arith.constant 0 : index
    %c0_0 = arith.constant 0 : index
    %c0_1 = arith.constant 0 : index
    %0 = vector.load %arg1[%c0, %c0_0, %c0_1] : memref<1x8x32xf32, #tpu.memory_space<vmem>>, vector<1x8x32xf32>
    %1 = vector.shape_cast %0 : vector<1x8x32xf32> to vector<8x32xf32>
    %c0_2 = arith.constant 0 : index
    %c0_3 = arith.constant 0 : index
    %2 = vector.load %arg2[%c0_2, %c0_3] : memref<32x32xf32, #tpu.memory_space<vmem>>, vector<32x32xf32>
    %cst = arith.constant dense<0.000000e+00> : vector<8x32xf32>
    %3 = tpu.matmul %1, %2, %cst {dimension_numbers = #tpu.dot_dimension_numbers<[1], [0], [0], [1], [0, 0, 1, 1], [], []>} : vector<8x32xf32>, vector<32x32xf32>, vector<8x32xf32> -> vector<8x32xf32>
    %cst_4 = arith.constant 0.353553385 : f32
    %4 = vector.broadcast %cst_4 : f32 to vector<8x32xf32>
    %5 = arith.mulf %3, %4 : vector<8x32xf32>
    %c0_5 = arith.constant 0 : index
    %c0_6 = arith.constant 0 : index
    %6 = vector.load %arg3[%c0_5, %c0_6] : memref<32x32xf32, #tpu.memory_space<vmem>>, vector<32x32xf32>
    %cst_7 = arith.constant dense<0.000000e+00> : vector<8x32xf32>
    %7 = tpu.matmul %1, %6, %cst_7 {dimension_numbers = #tpu.dot_dimension_numbers<[1], [0], [0], [1], [0, 0, 1, 1], [], []>} : vector<8x32xf32>, vector<32x32xf32>, vector<8x32xf32> -> vector<8x32xf32>
    %c0_8 = arith.constant 0 : index
    %c0_9 = arith.constant 0 : index
    %8 = vector.load %arg4[%c0_8, %c0_9] : memref<32x32xf32, #tpu.memory_space<vmem>>, vector<32x32xf32>
    %cst_10 = arith.constant dense<0.000000e+00> : vector<8x32xf32>
    %9 = tpu.matmul %1, %8, %cst_10 {dimension_numbers = #tpu.dot_dimension_numbers<[1], [0], [0], [1], [0, 0, 1, 1], [], []>} : vector<8x32xf32>, vector<32x32xf32>, vector<8x32xf32> -> vector<8x32xf32>
    %10 = vector.extract_strided_slice %5 {offsets = [0, 0], sizes = [8, 8], strides = [1, 1]} : vector<8x32xf32> to vector<8x8xf32>
    %11 = vector.extract_strided_slice %5 {offsets = [0, 8], sizes = [8, 8], strides = [1, 1]} : vector<8x32xf32> to vector<8x8xf32>
    %12 = vector.extract_strided_slice %5 {offsets = [0, 16], sizes = [8, 8], strides = [1, 1]} : vector<8x32xf32> to vector<8x8xf32>
    %13 = vector.extract_strided_slice %5 {offsets = [0, 24], sizes = [8, 8], strides = [1, 1]} : vector<8x32xf32> to vector<8x8xf32>
    %14 = vector.shape_cast %10 : vector<8x8xf32> to vector<1x8x8xf32>
    %15 = vector.shape_cast %11 : vector<8x8xf32> to vector<1x8x8xf32>
    %16 = vector.shape_cast %12 : vector<8x8xf32> to vector<1x8x8xf32>
    %17 = vector.shape_cast %13 : vector<8x8xf32> to vector<1x8x8xf32>
    %18 = tpu.concatenate %14, %15, %16, %17 in 0 : vector<1x8x8xf32>, vector<1x8x8xf32>, vector<1x8x8xf32>, vector<1x8x8xf32> -> vector<4x8x8xf32>
    %19 = vector.extract_strided_slice %7 {offsets = [0, 0], sizes = [8, 8], strides = [1, 1]} : vector<8x32xf32> to vector<8x8xf32>
    %20 = vector.extract_strided_slice %7 {offsets = [0, 8], sizes = [8, 8], strides = [1, 1]} : vector<8x32xf32> to vector<8x8xf32>
    %21 = vector.extract_strided_slice %7 {offsets = [0, 16], sizes = [8, 8], strides = [1, 1]} : vector<8x32xf32> to vector<8x8xf32>
    %22 = vector.extract_strided_slice %7 {offsets = [0, 24], sizes = [8, 8], strides = [1, 1]} : vector<8x32xf32> to vector<8x8xf32>
    %23 = vector.shape_cast %19 : vector<8x8xf32> to vector<1x8x8xf32>
    %24 = vector.shape_cast %20 : vector<8x8xf32> to vector<1x8x8xf32>
    %25 = vector.shape_cast %21 : vector<8x8xf32> to vector<1x8x8xf32>
    %26 = vector.shape_cast %22 : vector<8x8xf32> to vector<1x8x8xf32>
    %27 = tpu.concatenate %23, %24, %25, %26 in 0 : vector<1x8x8xf32>, vector<1x8x8xf32>, vector<1x8x8xf32>, vector<1x8x8xf32> -> vector<4x8x8xf32>
    %28 = vector.extract_strided_slice %9 {offsets = [0, 0], sizes = [8, 8], strides = [1, 1]} : vector<8x32xf32> to vector<8x8xf32>
    %29 = vector.extract_strided_slice %9 {offsets = [0, 8], sizes = [8, 8], strides = [1, 1]} : vector<8x32xf32> to vector<8x8xf32>
    %30 = vector.extract_strided_slice %9 {offsets = [0, 16], sizes = [8, 8], strides = [1, 1]} : vector<8x32xf32> to vector<8x8xf32>
    %31 = vector.extract_strided_slice %9 {offsets = [0, 24], sizes = [8, 8], strides = [1, 1]} : vector<8x32xf32> to vector<8x8xf32>
    %32 = vector.shape_cast %28 : vector<8x8xf32> to vector<1x8x8xf32>
    %33 = vector.shape_cast %29 : vector<8x8xf32> to vector<1x8x8xf32>
    %34 = vector.shape_cast %30 : vector<8x8xf32> to vector<1x8x8xf32>
    %35 = vector.shape_cast %31 : vector<8x8xf32> to vector<1x8x8xf32>
    %36 = tpu.concatenate %32, %33, %34, %35 in 0 : vector<1x8x8xf32>, vector<1x8x8xf32>, vector<1x8x8xf32>, vector<1x8x8xf32> -> vector<4x8x8xf32>
    "tpu.trace_start"() <{level = 10 : i32, message = "hqd,hkd->hqk"}> : () -> ()
    %cst_11 = arith.constant dense<0.000000e+00> : vector<4x8x8xf32>
    %37 = tpu.matmul %18, %27, %cst_11 {dimension_numbers = #tpu.dot_dimension_numbers<[2], [2], [1], [1], [0, 0, 0, 1, 1, 1], [0], [0]>} : vector<4x8x8xf32>, vector<4x8x8xf32>, vector<4x8x8xf32> -> vector<4x8x8xf32>
    "tpu.trace_stop"() : () -> ()
    %cst_12 = arith.constant dense<0xFF800000> : vector<4x8xf32>
    %38 = vector.multi_reduction <maximumf>, %37, %cst_12 [2] : vector<4x8x8xf32> to vector<4x8xf32>
    %39 = vector.shape_cast %38 : vector<4x8xf32> to vector<4x8x1xf32>
    %40 = vector.broadcast %39 : vector<4x8x1xf32> to vector<4x8x8xf32>
    %41 = arith.subf %37, %40 : vector<4x8x8xf32>
    %42 = math.exp %41 : vector<4x8x8xf32>
    %cst_13 = arith.constant dense<0.000000e+00> : vector<4x8xf32>
    %43 = vector.multi_reduction <add>, %42, %cst_13 [2] : vector<4x8x8xf32> to vector<4x8xf32>
    %44 = vector.shape_cast %43 : vector<4x8xf32> to vector<4x8x1xf32>
    %45 = vector.broadcast %44 : vector<4x8x1xf32> to vector<4x8x8xf32>
    %46 = arith.divf %42, %45 : vector<4x8x8xf32>
    "tpu.trace_start"() <{level = 10 : i32, message = "hqk,hkd->hqd"}> : () -> ()
    %cst_14 = arith.constant dense<0.000000e+00> : vector<4x8x8xf32>
    %47 = tpu.matmul %46, %36, %cst_14 {dimension_numbers = #tpu.dot_dimension_numbers<[2], [1], [1], [2], [0, 0, 0, 1, 1, 2], [0], [0]>} : vector<4x8x8xf32>, vector<4x8x8xf32>, vector<4x8x8xf32> -> vector<4x8x8xf32>
    "tpu.trace_stop"() : () -> ()
    %48 = vector.extract_strided_slice %47 {offsets = [0, 0, 0], sizes = [1, 8, 8], strides = [1, 1, 1]} : vector<4x8x8xf32> to vector<1x8x8xf32>
    %49 = vector.shape_cast %48 : vector<1x8x8xf32> to vector<8x8xf32>
    %50 = vector.extract_strided_slice %47 {offsets = [1, 0, 0], sizes = [1, 8, 8], strides = [1, 1, 1]} : vector<4x8x8xf32> to vector<1x8x8xf32>
    %51 = vector.shape_cast %50 : vector<1x8x8xf32> to vector<8x8xf32>
    %52 = vector.extract_strided_slice %47 {offsets = [2, 0, 0], sizes = [1, 8, 8], strides = [1, 1, 1]} : vector<4x8x8xf32> to vector<1x8x8xf32>
    %53 = vector.shape_cast %52 : vector<1x8x8xf32> to vector<8x8xf32>
    %54 = vector.extract_strided_slice %47 {offsets = [3, 0, 0], sizes = [1, 8, 8], strides = [1, 1, 1]} : vector<4x8x8xf32> to vector<1x8x8xf32>
    %55 = vector.shape_cast %54 : vector<1x8x8xf32> to vector<8x8xf32>
    %56 = tpu.concatenate %49, %51, %53, %55 in 1 : vector<8x8xf32>, vector<8x8xf32>, vector<8x8xf32>, vector<8x8xf32> -> vector<8x32xf32>
    %c0_15 = arith.constant 0 : index
    %c0_16 = arith.constant 0 : index
    %57 = vector.load %arg5[%c0_15, %c0_16] : memref<32x32xf32, #tpu.memory_space<vmem>>, vector<32x32xf32>
    %cst_17 = arith.constant dense<0.000000e+00> : vector<8x32xf32>
    %58 = tpu.matmul %56, %57, %cst_17 {dimension_numbers = #tpu.dot_dimension_numbers<[1], [0], [0], [1], [0, 0, 1, 1], [], []>} : vector<8x32xf32>, vector<32x32xf32>, vector<8x32xf32> -> vector<8x32xf32>
    %59 = vector.shape_cast %58 : vector<8x32xf32> to vector<1x8x32xf32>
    %c0_18 = arith.constant 0 : index
    %c0_19 = arith.constant 0 : index
    %c0_20 = arith.constant 0 : index
    %60 = vector.load %arg6[%c0_18, %c0_19, %c0_20] : memref<1x8x32xf32, #tpu.memory_space<vmem>>, vector<1x8x32xf32>
    tpu.vector_store %arg6[%c0_18, %c0_19, %c0_20], %59 {strides = array<i32>} : memref<1x8x32xf32, #tpu.memory_space<vmem>>, vector<1x8x32xf32>,
    return
  }
  func.func @transform_0(%arg0: i32) -> (i32, i32, i32) {
    %c0_i32 = arith.constant 0 : i32
    %c0_i32_0 = arith.constant 0 : i32
    %c0_i32_1 = arith.constant 0 : i32
    return %arg0, %c0_i32, %c0_i32_0 : i32, i32, i32
  }
  func.func @transform_1(%arg0: i32) -> (i32, i32) {
    %c0_i32 = arith.constant 0 : i32
    %c0_i32_0 = arith.constant 0 : i32
    %c0_i32_1 = arith.constant 0 : i32
    return %c0_i32, %c0_i32_0 : i32, i32
  }
  func.func @transform_2(%arg0: i32) -> (i32, i32) {
    %c0_i32 = arith.constant 0 : i32
    %c0_i32_0 = arith.constant 0 : i32
    %c0_i32_1 = arith.constant 0 : i32
    return %c0_i32, %c0_i32_0 : i32, i32
  }
  func.func @transform_3(%arg0: i32) -> (i32, i32) {
    %c0_i32 = arith.constant 0 : i32
    %c0_i32_0 = arith.constant 0 : i32
    %c0_i32_1 = arith.constant 0 : i32
    return %c0_i32, %c0_i32_0 : i32, i32
  }
  func.func @transform_4(%arg0: i32) -> (i32, i32) {
    %c0_i32 = arith.constant 0 : i32
    %c0_i32_0 = arith.constant 0 : i32
    %c0_i32_1 = arith.constant 0 : i32
    return %c0_i32, %c0_i32_0 : i32, i32
  }
  func.func @transform_5(%arg0: i32) -> (i32, i32, i32) {
    %c0_i32 = arith.constant 0 : i32
    %c0_i32_0 = arith.constant 0 : i32
    %c0_i32_1 = arith.constant 0 : i32
    return %arg0, %c0_i32, %c0_i32_0 : i32, i32, i32
  }
}

module attributes {stable_mosaic.version = 11 : i64} {
  func.func @_mha_kernel(%arg0: i32, %arg1: memref<1x8x32xf32, #tpu.memory_space<vmem>>, %arg2: memref<32x32xf32, #tpu.memory_space<vmem>>, %arg3: memref<32x32xf32, #tpu.memory_space<vmem>>, %arg4: memref<32x32xf32, #tpu.memory_space<vmem>>, %arg5: memref<32x32xf32, #tpu.memory_space<vmem>>, %arg6: memref<1x8x32xf32, #tpu.memory_space<vmem>>) attributes {dimension_semantics = [#tpu.dimension_semantics<parallel>], iteration_bounds = array<i64: 2>, scalar_prefetch = 0 : i64, scratch_operands = 0 : i64, tpu.core_type = #tpu.core_type<tc>, window_params = [{transform_indices = @transform_0, window_bounds = array<i64: 1, 8, 32>}, {pipeline_mode = #tpu.pipeline_mode<synchronous>, transform_indices = @transform_1, window_bounds = array<i64: 32, 32>}, {pipeline_mode = #tpu.pipeline_mode<synchronous>, transform_indices = @transform_2, window_bounds = array<i64: 32, 32>}, {pipeline_mode = #tpu.pipeline_mode<synchronous>, transform_indices = @transform_3, window_bounds = array<i64: 32, 32>}, {pipeline_mode = #tpu.pipeline_mode<synchronous>, transform_indices = @transform_4, window_bounds = array<i64: 32, 32>}, {transform_indices = @transform_5, window_bounds = array<i64: 1, 8, 32>}]} {
    %c0 = arith.constant 0 : index
    %c0_0 = arith.constant 0 : index
    %c0_1 = arith.constant 0 : index
    %0 = vector.load %arg1[%c0, %c0_0, %c0_1] : memref<1x8x32xf32, #tpu.memory_space<vmem>>, vector<1x8x32xf32>
    %1 = vector.shape_cast %0 : vector<1x8x32xf32> to vector<8x32xf32>
    %c0_2 = arith.constant 0 : index
    %c0_3 = arith.constant 0 : index
    %2 = vector.load %arg2[%c0_2, %c0_3] : memref<32x32xf32, #tpu.memory_space<vmem>>, vector<32x32xf32>
    %cst = arith.constant dense<0.000000e+00> : vector<8x32xf32>
    %3 = tpu.matmul %1, %2, %cst {dimension_numbers = #tpu.dot_dimension_numbers<[1], [0], [0], [1], [0, 0, 1, 1], [], []>} : vector<8x32xf32>, vector<32x32xf32>, vector<8x32xf32> -> vector<8x32xf32>
    %cst_4 = arith.constant 0.353553385 : f32
    %4 = vector.broadcast %cst_4 : f32 to vector<8x32xf32>
    %5 = arith.mulf %3, %4 : vector<8x32xf32>
    %c0_5 = arith.constant 0 : index
    %c0_6 = arith.constant 0 : index
    %6 = vector.load %arg3[%c0_5, %c0_6] : memref<32x32xf32, #tpu.memory_space<vmem>>, vector<32x32xf32>
    %cst_7 = arith.constant dense<0.000000e+00> : vector<8x32xf32>
    %7 = tpu.matmul %1, %6, %cst_7 {dimension_numbers = #tpu.dot_dimension_numbers<[1], [0], [0], [1], [0, 0, 1, 1], [], []>} : vector<8x32xf32>, vector<32x32xf32>, vector<8x32xf32> -> vector<8x32xf32>
    %c0_8 = arith.constant 0 : index
    %c0_9 = arith.constant 0 : index
    %8 = vector.load %arg4[%c0_8, %c0_9] : memref<32x32xf32, #tpu.memory_space<vmem>>, vector<32x32xf32>
    %cst_10 = arith.constant dense<0.000000e+00> : vector<8x32xf32>
    %9 = tpu.matmul %1, %8, %cst_10 {dimension_numbers = #tpu.dot_dimension_numbers<[1], [0], [0], [1], [0, 0, 1, 1], [], []>} : vector<8x32xf32>, vector<32x32xf32>, vector<8x32xf32> -> vector<8x32xf32>
    %10 = vector.extract_strided_slice %5 {offsets = [0, 0], sizes = [8, 8], strides = [1, 1]} : vector<8x32xf32> to vector<8x8xf32>
    %11 = vector.extract_strided_slice %5 {offsets = [0, 8], sizes = [8, 8], strides = [1, 1]} : vector<8x32xf32> to vector<8x8xf32>
    %12 = vector.extract_strided_slice %5 {offsets = [0, 16], sizes = [8, 8], strides = [1, 1]} : vector<8x32xf32> to vector<8x8xf32>
    %13 = vector.extract_strided_slice %5 {offsets = [0, 24], sizes = [8, 8], strides = [1, 1]} : vector<8x32xf32> to vector<8x8xf32>
    %14 = vector.shape_cast %10 : vector<8x8xf32> to vector<1x8x8xf32>
    %15 = vector.shape_cast %11 : vector<8x8xf32> to vector<1x8x8xf32>
    %16 = vector.shape_cast %12 : vector<8x8xf32> to vector<1x8x8xf32>
    %17 = vector.shape_cast %13 : vector<8x8xf32> to vector<1x8x8xf32>
    %18 = tpu.concatenate %14, %15, %16, %17 in 0 : vector<1x8x8xf32>, vector<1x8x8xf32>, vector<1x8x8xf32>, vector<1x8x8xf32> -> vector<4x8x8xf32>
    %19 = vector.extract_strided_slice %7 {offsets = [0, 0], sizes = [8, 8], strides = [1, 1]} : vector<8x32xf32> to vector<8x8xf32>
    %20 = vector.extract_strided_slice %7 {offsets = [0, 8], sizes = [8, 8], strides = [1, 1]} : vector<8x32xf32> to vector<8x8xf32>
    %21 = vector.extract_strided_slice %7 {offsets = [0, 16], sizes = [8, 8], strides = [1, 1]} : vector<8x32xf32> to vector<8x8xf32>
    %22 = vector.extract_strided_slice %7 {offsets = [0, 24], sizes = [8, 8], strides = [1, 1]} : vector<8x32xf32> to vector<8x8xf32>
    %23 = vector.shape_cast %19 : vector<8x8xf32> to vector<1x8x8xf32>
    %24 = vector.shape_cast %20 : vector<8x8xf32> to vector<1x8x8xf32>
    %25 = vector.shape_cast %21 : vector<8x8xf32> to vector<1x8x8xf32>
    %26 = vector.shape_cast %22 : vector<8x8xf32> to vector<1x8x8xf32>
    %27 = tpu.concatenate %23, %24, %25, %26 in 0 : vector<1x8x8xf32>, vector<1x8x8xf32>, vector<1x8x8xf32>, vector<1x8x8xf32> -> vector<4x8x8xf32>
    %28 = vector.extract_strided_slice %9 {offsets = [0, 0], sizes = [8, 8], strides = [1, 1]} : vector<8x32xf32> to vector<8x8xf32>
    %29 = vector.extract_strided_slice %9 {offsets = [0, 8], sizes = [8, 8], strides = [1, 1]} : vector<8x32xf32> to vector<8x8xf32>
    %30 = vector.extract_strided_slice %9 {offsets = [0, 16], sizes = [8, 8], strides = [1, 1]} : vector<8x32xf32> to vector<8x8xf32>
    %31 = vector.extract_strided_slice %9 {offsets = [0, 24], sizes = [8, 8], strides = [1, 1]} : vector<8x32xf32> to vector<8x8xf32>
    %32 = vector.shape_cast %28 : vector<8x8xf32> to vector<1x8x8xf32>
    %33 = vector.shape_cast %29 : vector<8x8xf32> to vector<1x8x8xf32>
    %34 = vector.shape_cast %30 : vector<8x8xf32> to vector<1x8x8xf32>
    %35 = vector.shape_cast %31 : vector<8x8xf32> to vector<1x8x8xf32>
    %36 = tpu.concatenate %32, %33, %34, %35 in 0 : vector<1x8x8xf32>, vector<1x8x8xf32>, vector<1x8x8xf32>, vector<1x8x8xf32> -> vector<4x8x8xf32>
    "tpu.trace_start"() <{level = 10 : i32, message = "hqd,hkd->hqk"}> : () -> ()
    %cst_11 = arith.constant dense<0.000000e+00> : vector<4x8x8xf32>
    %37 = tpu.matmul %18, %27, %cst_11 {dimension_numbers = #tpu.dot_dimension_numbers<[2], [2], [1], [1], [0, 0, 0, 1, 1, 1], [0], [0]>} : vector<4x8x8xf32>, vector<4x8x8xf32>, vector<4x8x8xf32> -> vector<4x8x8xf32>
    "tpu.trace_stop"() : () -> ()
    %cst_12 = arith.constant dense<0xFF800000> : vector<4x8xf32>
    %38 = vector.multi_reduction <maximumf>, %37, %cst_12 [2] : vector<4x8x8xf32> to vector<4x8xf32>
    %39 = vector.shape_cast %38 : vector<4x8xf32> to vector<4x8x1xf32>
    %40 = vector.broadcast %39 : vector<4x8x1xf32> to vector<4x8x8xf32>
    %41 = arith.subf %37, %40 : vector<4x8x8xf32>
    %42 = math.exp %41 : vector<4x8x8xf32>
    %cst_13 = arith.constant dense<0.000000e+00> : vector<4x8xf32>
    %43 = vector.multi_reduction <add>, %42, %cst_13 [2] : vector<4x8x8xf32> to vector<4x8xf32>
    %44 = vector.shape_cast %43 : vector<4x8xf32> to vector<4x8x1xf32>
    %45 = vector.broadcast %44 : vector<4x8x1xf32> to vector<4x8x8xf32>
    %46 = arith.divf %42, %45 : vector<4x8x8xf32>
    "tpu.trace_start"() <{level = 10 : i32, message = "hqk,hkd->hqd"}> : () -> ()
    %cst_14 = arith.constant dense<0.000000e+00> : vector<4x8x8xf32>
    %47 = tpu.matmul %46, %36, %cst_14 {dimension_numbers = #tpu.dot_dimension_numbers<[2], [1], [1], [2], [0, 0, 0, 1, 1, 2], [0], [0]>} : vector<4x8x8xf32>, vector<4x8x8xf32>, vector<4x8x8xf32> -> vector<4x8x8xf32>
    "tpu.trace_stop"() : () -> ()
    %48 = vector.extract_strided_slice %47 {offsets = [0, 0, 0], sizes = [1, 8, 8], strides = [1, 1, 1]} : vector<4x8x8xf32> to vector<1x8x8xf32>
    %49 = vector.shape_cast %48 : vector<1x8x8xf32> to vector<8x8xf32>
    %50 = vector.extract_strided_slice %47 {offsets = [1, 0, 0], sizes = [1, 8, 8], strides = [1, 1, 1]} : vector<4x8x8xf32> to vector<1x8x8xf32>
    %51 = vector.shape_cast %50 : vector<1x8x8xf32> to vector<8x8xf32>
    %52 = vector.extract_strided_slice %47 {offsets = [2, 0, 0], sizes = [1, 8, 8], strides = [1, 1, 1]} : vector<4x8x8xf32> to vector<1x8x8xf32>
    %53 = vector.shape_cast %52 : vector<1x8x8xf32> to vector<8x8xf32>
    %54 = vector.extract_strided_slice %47 {offsets = [3, 0, 0], sizes = [1, 8, 8], strides = [1, 1, 1]} : vector<4x8x8xf32> to vector<1x8x8xf32>
    %55 = vector.shape_cast %54 : vector<1x8x8xf32> to vector<8x8xf32>
    %56 = tpu.concatenate %49, %51, %53, %55 in 1 : vector<8x8xf32>, vector<8x8xf32>, vector<8x8xf32>, vector<8x8xf32> -> vector<8x32xf32>
    %c0_15 = arith.constant 0 : index
    %c0_16 = arith.constant 0 : index
    %57 = vector.load %arg5[%c0_15, %c0_16] : memref<32x32xf32, #tpu.memory_space<vmem>>, vector<32x32xf32>
    %cst_17 = arith.constant dense<0.000000e+00> : vector<8x32xf32>
    %58 = tpu.matmul %56, %57, %cst_17 {dimension_numbers = #tpu.dot_dimension_numbers<[1], [0], [0], [1], [0, 0, 1, 1], [], []>} : vector<8x32xf32>, vector<32x32xf32>, vector<8x32xf32> -> vector<8x32xf32>
    %59 = vector.shape_cast %58 : vector<8x32xf32> to vector<1x8x32xf32>
    %c0_18 = arith.constant 0 : index
    %c0_19 = arith.constant 0 : index
    %c0_20 = arith.constant 0 : index
    %60 = vector.load %arg6[%c0_18, %c0_19, %c0_20] : memref<1x8x32xf32, #tpu.memory_space<vmem>>, vector<1x8x32xf32>
    tpu.vector_store %arg6[%c0_18, %c0_19, %c0_20], %59 {strides = array<i32>} : memref<1x8x32xf32, #tpu.memory_space<vmem>>, vector<1x8x32xf32>,
    return
  }
  func.func @transform_0(%arg0: i32) -> (i32, i32, i32) {
    %c0_i32 = arith.constant 0 : i32
    %c0_i32_0 = arith.constant 0 : i32
    %c0_i32_1 = arith.constant 0 : i32
    return %arg0, %c0_i32, %c0_i32_0 : i32, i32, i32
  }
  func.func @transform_1(%arg0: i32) -> (i32, i32) {
    %c0_i32 = arith.constant 0 : i32
    %c0_i32_0 = arith.constant 0 : i32
    %c0_i32_1 = arith.constant 0 : i32
    return %c0_i32, %c0_i32_0 : i32, i32
  }
  func.func @transform_2(%arg0: i32) -> (i32, i32) {
    %c0_i32 = arith.constant 0 : i32
    %c0_i32_0 = arith.constant 0 : i32
    %c0_i32_1 = arith.constant 0 : i32
    return %c0_i32, %c0_i32_0 : i32, i32
  }
  func.func @transform_3(%arg0: i32) -> (i32, i32) {
    %c0_i32 = arith.constant 0 : i32
    %c0_i32_0 = arith.constant 0 : i32
    %c0_i32_1 = arith.constant 0 : i32
    return %c0_i32, %c0_i32_0 : i32, i32
  }
  func.func @transform_4(%arg0: i32) -> (i32, i32) {
    %c0_i32 = arith.constant 0 : i32
    %c0_i32_0 = arith.constant 0 : i32
    %c0_i32_1 = arith.constant 0 : i32
    return %c0_i32, %c0_i32_0 : i32, i32
  }
  func.func @transform_5(%arg0: i32) -> (i32, i32, i32) {
    %c0_i32 = arith.constant 0 : i32
    %c0_i32_0 = arith.constant 0 : i32
    %c0_i32_1 = arith.constant 0 : i32
    return %arg0, %c0_i32, %c0_i32_0 : i32, i32, i32
  }
}

</mosaic_0001>

<bundles_post_ra>
// kernel: tpu_custom_call.1
= control target key start
LH: loop header
LB: loop body
LE: loop exit
PB: predicated region body
PF: predicated region fallthrough
CT: control target
= control target key end

     0   :  { %10 = vsyncpa [#allocation3], 0  ;;  %s2333_s0 = inlined_call_operand.hbm [shape: f32[2,8,32], index: 0, kind: input, shape index: {}]   ;;  %s2334_s1 = inlined_call_operand.hbm [shape: f32[32,32], index: 1, kind: input, shape index: {}]   ;;  %s2335_s2 = inlined_call_operand.hbm [shape: f32[32,32], index: 2, kind: input, shape index: {}]   ;;  %s2336_s3 = inlined_call_operand.hbm [shape: f32[32,32], index: 3, kind: input, shape index: {}]   ;;  %s2337_s4 = inlined_call_operand.hbm [shape: f32[32,32], index: 4, kind: input, shape index: {}]   ;;  %s2338_s5 = inlined_call_operand.hbm [shape: f32[2,8,32], index: 5, kind: output, shape index: {}]  }
   0x1   :  { %12 = vsyncpa [#allocation3 + $0x1], 0 }
   0x2   :  { %13 = vsyncpa [#allocation6], 0 }
   0x3   :  { %14 = vsyncpa [#allocation9], 0 }
   0x4   :  { %15 = vsyncpa [#allocation4], 0 }
   0x5   :  { %17 = vsyncpa [#allocation4 + $0x1], 0  ;;  %s1959_s18 = smov 0   ;;  %s1961_s19 = smov 0  }
   0x6   :  { %s1963_s20 = smov 0   ;;  %s1965_s21 = smov 0  }
   0x7 LB: > { %s1912_s22 = smov [#allocation5]   ;;  %s1980_s24 = sadd.s32 4294967295, %s1910_s21   ;;  %s1910_s21 = sphi %s1965_s21, %s2362_s21   ;;  %s1906_s20 = sphi %s1963_s20, %s2361_s20   ;;  %s1902_s19 = sphi %s1961_s19, %s2360_s19   ;;  %s1898_s18 = sphi %s1959_s18, %s2359_s18  }
   0x8   : > { %s176_s23 = sshll.u32 %s1912_s22, 4  ;;  %p1401_p0 = scmp.ge.s32.totalorder %s1910_s21, 1  ;;  %s1985_s23 = int_to_ptr.vmem [resolvable:$true] %s176_s23 }
   0x9   : > { %p2339_p1 = scmp.eq.s32.totalorder %s1980_s24, 0  ;;  %p164_p2 = scmp.lt.s32.totalorder %s1910_s21, 3 }
   0xa   : > { %s1913_s26 = smov [#allocation8]   ;;  %s1914_s29 = smov [#allocation7]  }
   0xb   : > { %p1987_p3 = pnand %p1401_p0, %p164_p2  ;;  %s202_s27 = sshll.u32 %s1913_s26, 4  ;;  %s2000_s27 = int_to_ptr.vmem [resolvable:$true] %s202_s27 }
   0xc   : > { %s189_s30 = sshll.u32 %s1914_s29, 4  ;;  %s1694_s8 = scalar_lea.hbm %s2334_s1, 512  ;;  %s2002_s30 = int_to_ptr.vmem [resolvable:$true] %s189_s30 }
   0xd   : > { %s2342_s25 = scalar_select %p1987_p3, 1, 0 }
   0xe   : > { %p1600_p5 = pneg %p1987_p3  ;;  %p1695_p7 = scmp.ne.s32.totalorder %s2334_s1, %s1694_s8 }
   0xf   : > { %p1701_p11 = scmp.lt.u32.totalorder %s1694_s8, %s2334_s1 }
  0x10   : > { %p1996_p6 = pnand %p1600_p5, %p2339_p1 }
  0x12   : > { %p2012_p8 = pneg %p1996_p6 }
  0x14   : > { %p1697_p9 = pnand %p2012_p8, %p1695_p7 }
  0x16   : > { %p1698_p10 = pneg %p1697_p9 }
  0x18   : > { %p1703_p12 = pnand %p1701_p11, %p1698_p10 }
  0x1a   : > { %1706 = shalt.err (!%p1703_p12)
}
  0x1b   : > { %s1707_s14 = scalar_lea.vmem %s1985_s23, 512  ;;  %p1715_p5 = scmp.lt.s32.totalorder %s1985_s23, %s1985_s23 }
  0x1c   : > { %p1708_p13 = scmp.ne.s32.totalorder %s1985_s23, %s1707_s14  ;;  %p1716_p4 = scmp.lt.s32.totalorder %s1707_s14, %s1707_s14 }
  0x1e   : > { %p1710_p0 = pnand %p1708_p13, %p2012_p8  ;;  %p1717_p7 = por %p1716_p4, %p1715_p5 }
  0x20   : > { %p1711_p2 = pneg %p1710_p0 }
  0x22   : > { %p1718_p9 = pnand %p1717_p7, %p1711_p2 }
  0x24   : > { %1721 = shalt.err (!%p1718_p9)
}
  0x25   : > { %s1915_s15 = smov 128   ;;  %s1916_s16 = smov 8  }
  0x26   : > { %1603 = dma.hbm_to_vmem [thread:$0]  (!%p1996_p6), %s2334_s1, 512, %s1985_s23, [#allocation6], %s1915_s15, %s1915_s15, %s1916_s16  }
  0x27   : > { %s1722_s6 = scalar_lea.hbm %s2336_s3, 512 }
  0x28   : > { %p1723_p4 = scmp.ne.s32.totalorder %s2336_s3, %s1722_s6  ;;  %p1729_p12 = scmp.lt.u32.totalorder %s1722_s6, %s2336_s3 }
  0x2a   : > { %p1725_p10 = pnand %p1723_p4, %p2012_p8 }
  0x2c   : > { %p1726_p11 = pneg %p1725_p10 }
  0x2e   : > { %p1731_p13 = pnand %p1729_p12, %p1726_p11 }
  0x30   : > { %1734 = shalt.err (!%p1731_p13)
}
  0x31   : > { %s1735_s23 = scalar_lea.vmem %s2000_s27, 512  ;;  %p1743_p7 = scmp.lt.s32.totalorder %s2000_s27, %s2000_s27 }
  0x32   : > { %p1736_p0 = scmp.ne.s32.totalorder %s2000_s27, %s1735_s23  ;;  %p1744_p9 = scmp.lt.s32.totalorder %s1735_s23, %s1735_s23 }
  0x34   : > { %p1738_p2 = pnand %p1736_p0, %p2012_p8  ;;  %p1745_p4 = por %p1744_p9, %p1743_p7 }
  0x36   : > { %p1739_p5 = pneg %p1738_p2 }
  0x38   : > { %p1746_p10 = pnand %p1745_p4, %p1739_p5 }
  0x3a   : > { %1749 = shalt.err (!%p1746_p10)
}
  0x3b   : > { %1609 = dma.hbm_to_vmem [thread:$0]  (!%p1996_p6), %s2336_s3, 512, %s2000_s27, [#allocation9], %s1915_s15, %s1915_s15, %s1916_s16  }
  0x3c   : > { %s1750_s22 = scalar_lea.hbm %s2335_s2, 512 }
  0x3d   : > { %p1751_p11 = scmp.ne.s32.totalorder %s2335_s2, %s1750_s22  ;;  %p1757_p0 = scmp.lt.u32.totalorder %s1750_s22, %s2335_s2 }
  0x3f   : > { %p1753_p12 = pnand %p1751_p11, %p2012_p8 }
  0x41   : > { %p1754_p13 = pneg %p1753_p12 }
  0x43   : > { %p1759_p2 = pnand %p1757_p0, %p1754_p13 }
  0x45   : > { %1762 = shalt.err (!%p1759_p2)
}
  0x46   : > { %s1763_s27 = scalar_lea.vmem %s2002_s30, 512  ;;  %p1771_p4 = scmp.lt.s32.totalorder %s2002_s30, %s2002_s30 }
  0x47   : > { %p1764_p5 = scmp.ne.s32.totalorder %s2002_s30, %s1763_s27  ;;  %p1772_p10 = scmp.lt.s32.totalorder %s1763_s27, %s1763_s27 }
  0x49   : > { %p1766_p7 = pnand %p1764_p5, %p2012_p8  ;;  %p1773_p11 = por %p1772_p10, %p1771_p4 }
  0x4b   : > { %p1767_p9 = pneg %p1766_p7 }
  0x4d   : > { %p1774_p12 = pnand %p1773_p11, %p1767_p9 }
  0x4f   : > { %1777 = shalt.err (!%p1774_p12)
}
  0x50   : > { %1606 = dma.hbm_to_vmem [thread:$0]  (!%p1996_p6), %s2335_s2, 512, %s2002_s30, [#allocation6], %s1915_s15, %s1915_s15, %s1916_s16  }
  0x51   : > { %s1917_s10 = smov [#allocation10]   ;;  %s1778_s14 = scalar_lea.hbm %s2337_s4, 512 }
  0x52   : > { %s215_s23 = sshll.u32 %s1917_s10, 4  ;;  %p1779_p13 = scmp.ne.s32.totalorder %s2337_s4, %s1778_s14  ;;  %s216_s23 = int_to_ptr.vmem [resolvable:$true] %s215_s23 }
  0x53   : > { %p1785_p5 = scmp.lt.u32.totalorder %s1778_s14, %s2337_s4 }
  0x54   : > { %p1781_p0 = pnand %p1779_p13, %p2012_p8 }
  0x56   : > { %p1782_p2 = pneg %p1781_p0 }
  0x58   : > { %p1787_p7 = pnand %p1785_p5, %p1782_p2 }
  0x5a   : > { %1790 = shalt.err (!%p1787_p7)
}
  0x5b   : > { %s1791_s30 = scalar_lea.vmem %s216_s23, 512  ;;  %p1799_p11 = scmp.lt.s32.totalorder %s216_s23, %s216_s23 }
  0x5c   : > { %p1792_p9 = scmp.ne.s32.totalorder %s216_s23, %s1791_s30  ;;  %p1800_p12 = scmp.lt.s32.totalorder %s1791_s30, %s1791_s30 }
  0x5e   : > { %p1794_p4 = pnand %p1792_p9, %p2012_p8  ;;  %p1801_p1 = por %p1800_p12, %p1799_p11 }
  0x60   : > { %p1795_p10 = pneg %p1794_p4 }
  0x62   : > { %p1802_p3 = pnand %p1801_p1, %p1795_p10 }
  0x64   : > { %1805 = shalt.err (!%p1802_p3)
}
  0x65   : > { %1612 = dma.hbm_to_vmem [thread:$0]  (!%p1996_p6), %s2337_s4, 512, %s216_s23, [#allocation9], %s1915_s15, %s1915_s15, %s1916_s16  }
  0x66   : > { %s1400_s28 = sadd.s32 4294967294, %s1910_s21   ;;  %s2111_s11 = sadd.s32 1, %s1910_s21  }
  0x67   : > { %s27_s27 = ssub.s32 %s1910_s21, %s2111_s11  ;;  %s30_s8 = sadd.s32 1, %s1906_s20 }
  0x68   : > { %p28_p1 = scmp.eq.s32.totalorder %s27_s27, 0  ;;  %p37_p3 = scmp.ne.s32.totalorder %s1906_s20, %s1902_s19 }
  0x69   : > { %p38_p8 = scmp.eq.s32.totalorder %s1910_s21, 0  ;;  %p43_p13 = scmp.ne.s32.totalorder %s1902_s19, %s1898_s18 }
  0x6a   : > { %s2122_s9 = scalar_select %p28_p1, %s1906_s20, %s30_s8  }
  0x6b   : > { %p2124_p0 = por %p38_p8, %p37_p3  ;;  %p2346_p2 = scmp.eq.s32.totalorder %s1980_s24, 0 }
  0x6c   : > { %p151_p5 = scmp.eq.s32.totalorder %s1980_s24, 1  ;;  %p157_p7 = scmp.eq.s32.totalorder %s1400_s28, 1 }
  0x6d   : > { %p2130_p6 = por %p2346_p2, %p43_p13  ;;  %p1625_p9 = scmp.lt.s32.totalorder %s1910_s21, 2 }
  0x6e   : > { %s229_s16 = sand.u32 1, %s1906_s20   ;;  %p2137_p4 = por %p151_p5, %p37_p3 }
  0x6f   : > { %p2141_p10 = por %p157_p7, %p43_p13  ;;  %s1407_s13 = sshll.u32 %s229_s16, 3 }
  0x70   : > { %s2348_s23 = scalar_select %p2137_p4, 1, 0 }
  0x71   : > { %s2349_s12 = scalar_select %p2141_p10, 1, 0 }
  0x72   : > { %s1408_s14 = sshll.u32 %s1910_s21, 7  ;;  %s233_s29 = scalar_lea.vmem [#allocation2], %s1407_s13 }
  0x73   : > { %s2149_s26 = scalar_lea.hbm %s2333_s0, %s1408_s14  ;;  %s240_s30 = sshll.u32 %s233_s29, 4  ;;  %s2151_s30 = int_to_ptr.vmem [resolvable:$true] %s240_s30 }
  0x74   : > { %p2155_p11 = pnand %p1625_p9, %p2124_p0  ;;  %s230_s7 = scalar_lea.sflag [#allocation3], %s229_s16 }
  0x75   : > { %s1806_s28 = scalar_lea.hbm %s2149_s26, 128  ;;  %s1811_s13 = scalar_lea.hbm %s2333_s0, 256 }
  0x76   : > { %p1807_p12 = scmp.ne.s32.totalorder %s2149_s26, %s1806_s28  ;;  %p1808_p1 = pneg %p2155_p11 }
  0x77   : > { %p1812_p13 = scmp.lt.u32.totalorder %s2149_s26, %s2333_s0  ;;  %p1813_p0 = scmp.lt.u32.totalorder %s1811_s13, %s1806_s28 }
  0x78   : > { %p1809_p3 = pnand %p1808_p1, %p1807_p12  ;;  %p1815_p5 = scmp.lt.u32.totalorder %s1806_s28, %s2149_s26 }
  0x79   : > { %p1814_p2 = por %p1813_p0, %p1812_p13 }
  0x7a   : > { %p1810_p8 = pneg %p1809_p3 }
  0x7b   : > { %p1816_p7 = por %p1815_p5, %p1814_p2 }
  0x7d   : > { %p1817_p9 = pnand %p1816_p7, %p1810_p8 }
  0x7f   : > { %1820 = shalt.err (!%p1817_p9)
}
  0x80   : > { %s1821_s16 = scalar_lea.vmem %s2151_s30, 128  ;;  %s1918_s17 = smov [#allocation2]  }
  0x81   : > { %p1822_p12 = scmp.ne.s32.totalorder %s2151_s30, %s1821_s16  ;;  %s1826_s22 = sshll.u32 %s1918_s17, 4  ;;  %s1827_s22 = int_to_ptr.vmem [resolvable:$false] %s1826_s22 }
  0x82   : > { %s1828_s29 = scalar_lea.vmem %s1827_s22, 256  ;;  %p1829_p4 = scmp.lt.s32.totalorder %s2151_s30, %s1827_s22 }
  0x83   : > { %p1824_p3 = pnand %p1822_p12, %p1808_p1  ;;  %p1830_p13 = scmp.lt.s32.totalorder %s1828_s29, %s1821_s16 }
  0x85   : > { %p1825_p10 = pneg %p1824_p3  ;;  %p1831_p0 = por %p1830_p13, %p1829_p4 }
  0x87   : > { %p1832_p2 = pnand %p1831_p0, %p1825_p10 }
  0x89   : > { %1835 = shalt.err (!%p1832_p2)
}
  0x8a   : > { %1616 = dma.hbm_to_vmem [thread:$0]  (!%p2155_p11), %s2149_s26, 128, %s2151_s30, %s230_s7  }
  0x8b   : > { %p2351_p8 = scmp.ne.s32.totalorder %s2342_s25, 0 }
  0x8c   : > { %s2187_s28 = sand.u32 (!%p2351_p8), 1, %s1902_s19  }
  0x8d   : > { %249 = sbr.rel (%p2351_p8) target bundleno = 1585 (0x631), region = 40  ;;  %s1410_s27 = sshll.u32 (!%p2351_p8), %s2187_s28, 3 }
  0x8e   : > { %s252_s8 = scalar_lea.sflag (!%p2351_p8), [#allocation3], %s2187_s28  ;;  %s2193_s13 = scalar_lea.vmem (!%p2351_p8), [#allocation2], %s1410_s27 }
  0x94   : > { %1881 = dma.done.wait (%p2130_p6), %s252_s8, 128  }
  0x95   : > { %1883 = vsyncadd (%p2130_p6), %s252_s8, 4294967168  ;;  %p2352_p4 = scmp.eq.s32.totalorder %s1980_s24, 0 }
  0x97   : > { %1885 = dma.done.wait (%p2352_p4), [#allocation6], 1024   ;;  %p2353_p10 = pmov %p2352_p4 }
  0x98   : > { %p2354_p11 = pmov %p2352_p4 }
  0x99   : > { %1887 = vsyncadd (%p2353_p10), [#allocation6], 4294966272 }
  0x9a   : > { %1889 = dma.done.wait (%p2354_p11), [#allocation9], 1024   ;;  %p2355_p1 = pmov %p2352_p4 }
  0x9b   : > { %v1919_v0 = vmov 0.0|0.0   ;;  %vm1920_vm0 = vmmov 0   ;;  %v1921_v1 = vmov 0.0   ;;  %v378_v2 = vld [vmem:[#allocation7] sm:$0xff]  ;;  %v379_v3 = vld [vmem:[#allocation7 + $0x8] sm:$0xff]  ;;  %v380_v7 = vld [vmem:[#allocation7 + $0x10] sm:$0xff] }
  0x9c   : > { %1891 = vsyncadd (%p2355_p1), [#allocation9], 4294966272  ;;  %1562 = vmatprep.subr.bf16.mxu1 %v1919_v0  ;;  %1556 = vmatprep.subr.bf16.mxu0 %v1919_v0  ;;  %v299_v4 = vld [vmem:[#allocation5] sm:$0xff]  ;;  %v1563_v5 = vpack.c.bf16 %v379_v3, %v378_v2  ;;  %v300_v6 = vld [vmem:[#allocation5 + $0x8] sm:$0xff]  ;;  %vm303_vm1 = vcmask 261120   ;;  %vm550_vm2 = vcmask 64512  }
  0x9d   : > { %1491 = vmatprep.mubr.msk.f32.mxu1 %vm1920_vm0, %v1921_v1  ;;  %1480 = vmatprep.mubr.msk.f32.mxu0 %vm1920_vm0, %v1921_v1  ;;  %v381_v8 = vld [vmem:[#allocation7 + $0x18] sm:$0xff]  ;;  %v1557_v9 = vpack.c.bf16 %v300_v6, %v299_v4  ;;  %v301_v10 = vld [vmem:[#allocation5 + $0x10] sm:$0xff]  ;;  %s1922_s25 = smov 112   ;;  %s1923_s15 = smov 120   ;;  %v452_v18 = vld [vmem:[#allocation8] sm:$0xff]  ;;  %vm1196_vm3 = vcmask 130048  }
  0x9e   : > { %v302_v11 = vld [vmem:[#allocation5 + $0x18] sm:$0xff]  ;;  %1564 = vmatpush3.bf16.msra.mxu1 %v1563_v5  ;;  %v1566_v12 = vpack.c.bf16 %v381_v8, %v380_v7  ;;  %v453_v19 = vld [vmem:[#allocation8 + $0x8] sm:$0xff]  ;;  %v454_v20 = vld [vmem:[#allocation8 + $0x10] sm:$0xff]  ;;  %s1924_s26 = smov 104   ;;  %s1925_s30 = smov 8   ;;  %vm1198_vm4 = vcmask 195584  }
  0x9f   : > { %1558 = vmatpush3.bf16.msra.mxu0 %v1557_v9  ;;  %1565 = vmatprep.subr.bf16.mxu1 %v1919_v0  ;;  %v1560_v13 = vpack.c.bf16 %v302_v11, %v301_v10  ;;  %v298_v14 = vld [vmem:[%s2193_s13] sm:$0xff]  ;;  %v1569_v23 = vpack.c.bf16 %v453_v19, %v452_v18  ;;  %s1926_s6 = smov 16   ;;  %s1927_s7 = smov 24  }
  0xa0   : > { %1559 = vmatprep.subr.bf16.mxu0 %v1919_v0  ;;  %v455_v24 = vld [vmem:[#allocation8 + $0x18] sm:$0xff]  ;;  %s1433_s10 = sshll.u32 %s1980_s24, 7  ;;  %s297_s14 = scalar_lea.vmem [#allocation11], %s1410_s27 }
  0xa1   : > { %v1572_v25 = vpack.c.bf16 %v455_v24, %v454_v20  ;;  %v1202_v24 = vld [vmem:[#allocation10 + $0x10] sm:$0xff]  ;;  %s1292_s16 = sshll.u32 %s297_s14, 4  ;;  %s2288_s29 = scalar_lea.hbm %s2338_s5, %s1433_s10  ;;  %s2290_s16 = int_to_ptr.vmem [resolvable:$true] %s1292_s16 }
  0xa2   : > { %1567 = vmatpush3.bf16.msra.mxu1 %v1566_v12  ;;  %s1279_s8 = scalar_lea.sflag [#allocation4], %s2187_s28  ;;  %s1836_s13 = scalar_lea.vmem %s2290_s16, 128 }
  0xa3   : > { %1561 = vmatpush3.bf16.msra.mxu0 %v1560_v13  ;;  %1505 = vmatprep.subr.mxu1 %v1921_v1  ;;  %p1837_p6 = scmp.ne.s32.totalorder %s2290_s16, %s1836_s13  ;;  %p2356_p5 = scmp.ne.s32.totalorder %s2348_s23, 0 }
  0xa4   : > { %1568 = vmatprep.subr.bf16.mxu0 %v1919_v0  ;;  %s1928_s24 = smov [#allocation11]  }
  0xa5   : > { %1492 = vmatmul.mubr.msk.f32.vlgmr.msra.gmra.mrb[0].mxu1 %vm303_vm1, %v298_v14  ;;  %p1838_p7 = pnand %p1837_p6, %p2356_p5  ;;  %s1840_s27 = sshll.u32 %s1928_s24, 4  ;;  %s1841_s27 = int_to_ptr.vmem [resolvable:$false] %s1840_s27 }
  0xa6   : > { %1481 = vmatmul.mubr.msk.f32.vlgmr.msra.gmra.mrb[0].mxu0 %vm303_vm1, %v298_v14  ;;  %1507 = vmatprep.mubr.msk.f32.mxu1 %vm1920_vm0, %v1921_v1  ;;  %p1843_p12 = scmp.lt.s32.totalorder %s2290_s16, %s1841_s27 }
  0xa7   : > { %1502 = vmatprep.mubr.msk.f32.mxu0 %vm1920_vm0, %v1921_v1  ;;  %1570 = vmatpush3.bf16.msra.mxu0 %v1569_v23  ;;  %p1839_p9 = pneg %p1838_p7 }
  0xa8   : > { %1571 = vmatprep.subr.bf16.mxu0 %v1919_v0 }
  0xab   : > { %1573 = vmatpush3.bf16.msra.mxu0 %v1572_v25  ;;  %v1203_v25 = vld [vmem:[#allocation10 + $0x18] sm:$0xff] }
  0xac   : > { %1525 = vmatprep.subr.mxu0 %v1921_v1 }
  0xae   : > { %1503 = vmatmul.mubr.msk.f32.vlgmr.msra.gmra.mrb[2].mxu0 %vm303_vm1, %v298_v14 }
  0xaf   : > { %1527 = vmatprep.mubr.msk.f32.mxu0 %vm1920_vm0, %v1921_v1 }
 0x178   : > { %v448_v15 = vpop.f32.mrb[0].mxu1 }
 0x179   : > { %536 = vrot.lane.b32.xlu1 %v448_v15, %s1922_s25  ;;  %534 = vrot.lane.b32.xlu0 %v448_v15, %s1923_s15  ;;  %v373_v16 = vpop.f32.mrb[0].mxu0  ;;  %v1493_v17 = vpop.f32.mrb[1].mxu1 }
 0x17a   : > { %v377_v21 = vmul.f32 0.35355338, %v373_v16  ;;  %1506 = vmatpush3.xpose.msk.msra.mxu1 %vm550_vm2, %v448_v15  ;;  %v1482_v22 = vpop.f32.mrb[1].mxu0 }
 0x17b   : > { %1510 = vmatprep.subr.mxu1 %v1921_v1  ;;  %v1201_v22 = vld [vmem:[#allocation10 + $0x8] sm:$0xff] }
 0x17d   : > { %1508 = vmatmul.mubr.msk.f32.vlgmr.msra.gmra.mrb[2].mxu1 %vm550_vm2, %v377_v21  ;;  %529 = vrot.lane.b32.xlu1 %v377_v21, %s1922_s25 }
 0x17e   : > { %527 = vrot.lane.b32.xlu0 %v377_v21, %s1923_s15  ;;  %1512 = vmatprep.mubr.msk.f32.mxu1 %vm1920_vm0, %v1921_v1 }
 0x181   : > { %531 = vrot.lane.b32.xlu1 %v377_v21, %s1924_s26  ;;  %v522_v35 = vpop.f32.mrb[2].mxu0  ;;  %v1200_v21 = vld [vmem:[#allocation10] sm:$0xff] }
 0x182   : > { %538 = vrot.lane.b32.xlu0 %v448_v15, %s1924_s26  ;;  %v1504_v36 = vpop.f32.mrb[3].mxu0  ;;  %1526 = vmatpush3.msra.mxu0 %v522_v35  ;;  %v1575_v23 = vpack.c.bf16 %v1201_v22, %v1200_v21 }
 0x183   : > { %1535 = vmatprep.subr.mxu0 %v1921_v1 }
 0x1eb   : > { %v535_v26 = vpop.permute.xlu0 %534  ;;  %v537_v27 = vpop.permute.xlu1 %536 }
 0x1ec   : > { %1511 = vmatpush3.xpose.msk.msra.mxu1 %vm550_vm2, %v535_v26  ;;  %v1578_v26 = vpack.c.bf16 %v1203_v25, %v1202_v24 }
 0x1ed   : > { %1515 = vmatprep.subr.mxu1 %v1921_v1 }
 0x1ef   : > { %v530_v29 = vpop.permute.xlu1 %529 }
 0x1f0   : > { %v528_v28 = vpop.permute.xlu0 %527 }
 0x1f1   : > { %1513 = vmatmul.mubr.msk.f32.vlgmr.msra.gmra.mrb[4].mxu1 %vm550_vm2, %v528_v28 }
 0x1f2   : > { %1516 = vmatpush3.xpose.msk.msra.mxu1 %vm550_vm2, %v537_v27  ;;  %1517 = vmatprep.mubr.msk.f32.mxu1 %vm1920_vm0, %v1921_v1 }
 0x1f3   : > { %1520 = vmatprep.subr.mxu1 %v1921_v1  ;;  %v532_v31 = vpop.permute.xlu1 %531 }
 0x1f4   : > { %v539_v30 = vpop.permute.xlu0 %538 }
 0x1f5   : > { %1518 = vmatmul.mubr.msk.f32.vlgmr.msra.gmra.mrb[6].mxu1 %vm550_vm2, %v530_v29 }
 0x1f6   : > { %1521 = vmatpush3.xpose.msk.msra.mxu1 %vm550_vm2, %v539_v30  ;;  %1522 = vmatprep.mubr.msk.f32.mxu1 %vm1920_vm0, %v1921_v1 }
 0x1f7   : > { %1530 = vmatprep.subr.mxu1 %v1921_v1 }
 0x1f9   : > { %1523 = vmatmul.mubr.msk.f32.vlgmr.msra.gmra.mrb[8].mxu1 %vm550_vm2, %v532_v31 }
 0x1fa   : > { %1532 = vmatprep.mubr.msk.f32.mxu1 %vm1920_vm0, %v1921_v1 }
 0x250   : > { %v621_v32 = vpop.f32.mrb[2].mxu1 }
 0x251   : > { %v1509_v33 = vpop.f32.mrb[3].mxu1  ;;  %v847_v34 = vsel %vm550_vm2, %v621_v32, -inf }
 0x252   : > { %848 = vmax.xlane.f32.xlu0 %v847_v34 }
 0x2c4   : > { %v695_v37 = vpop.f32.mrb[4].mxu1 }
 0x2c5   : > { %v1514_v38 = vpop.f32.mrb[5].mxu1  ;;  %v850_v39 = vsel %vm550_vm2, %v695_v37, -inf }
 0x2c6   : > { %851 = vmax.xlane.f32.xlu1 %v850_v39 }
 0x2c8   : > { %v769_v40 = vpop.f32.mrb[6].mxu1 }
 0x2c9   : > { %v1519_v41 = vpop.f32.mrb[7].mxu1  ;;  %v853_v42 = vsel %vm550_vm2, %v769_v40, -inf }
 0x2ca   : > { %854 = vmax.xlane.f32.xlu0 %v853_v42 }
 0x2cc   : > { %v843_v43 = vpop.f32.mrb[8].mxu1 }
 0x2cd   : > { %v1524_v44 = vpop.f32.mrb[9].mxu1  ;;  %v856_v45 = vsel %vm550_vm2, %v843_v43, -inf }
 0x2ce   : > { %857 = vmax.xlane.f32.xlu0 %v856_v45 }
 0x2d7   : > { %541 = vrot.lane.b32.xlu1 %v522_v35, %s1923_s15 }
 0x2df   : > { %v849_v46 = vpop.xlane.xlu0 %848 }
 0x2e0   : > { %v859_v47 = vsub.f32 %v621_v32, %v849_v46 }
 0x2e2   : > { %v863_v48 = vmul.f32 1.442695, %v859_v47 }
 0x2e4   : > { %1678 = vpow2.f32 %v863_v48 }
 0x2ee   : > { %v1679_v49 = vpop.eup %1678 }
 0x2ef   : > { %v871_v50 = vsel %vm550_vm2, %v1679_v49, 0.0 }
 0x2fb   : > { %872 = vadd.xlane.f32.xlu1 %v871_v50 }
 0x353   : > { %v852_v51 = vpop.xlane.xlu1 %851 }
 0x354   : > { %v860_v52 = vsub.f32 %v695_v37, %v852_v51 }
 0x356   : > { %v865_v53 = vmul.f32 1.442695, %v860_v52 }
 0x357   : > { %v855_v54 = vpop.xlane.xlu0 %854  ;;  %v542_v55 = vpop.permute.xlu1 %541 }
 0x358   : > { %1680 = vpow2.f32 %v865_v53  ;;  %v861_v56 = vsub.f32 %v769_v40, %v855_v54  ;;  %1531 = vmatpush3.msra.mxu1 %v542_v55 }
 0x359   : > { %1540 = vmatprep.subr.mxu1 %v1921_v1 }
 0x35a   : > { %v867_v57 = vmul.f32 1.442695, %v861_v56 }
 0x35b   : > { %v858_v58 = vpop.xlane.xlu0 %857 }
 0x35c   : > { %1682 = vpow2.f32 %v867_v57  ;;  %v862_v59 = vsub.f32 %v843_v43, %v858_v58 }
 0x35e   : > { %v869_v60 = vmul.f32 1.442695, %v862_v59 }
 0x360   : > { %1684 = vpow2.f32 %v869_v60 }
 0x362   : > { %v1681_v61 = vpop.eup %1680 }
 0x363   : > { %v874_v62 = vsel %vm550_vm2, %v1681_v61, 0.0 }
 0x364   : > { %875 = vadd.xlane.f32.xlu0 %v874_v62 }
 0x366   : > { %v1683_v63 = vpop.eup %1682 }
 0x367   : > { %v877_v2 = vsel %vm550_vm2, %v1683_v63, 0.0 }
 0x368   : > { %878 = vadd.xlane.f32.xlu1 %v877_v2 }
 0x36a   : > { %v1685_v3 = vpop.eup %1684 }
 0x36b   : > { %v880_v4 = vsel %vm550_vm2, %v1685_v3, 0.0 }
 0x36c   : > { %881 = vadd.xlane.f32.xlu0 %v880_v4 }
 0x379   : > { %547 = vrot.lane.b32.xlu1 %v522_v35, %s1924_s26 }
 0x382   : > { %544 = vrot.lane.b32.xlu0 %v522_v35, %s1922_s25  ;;  %s1842_s25 = scalar_lea.vmem %s1841_s27, 256 }
 0x383   : > { %p1844_p3 = scmp.lt.s32.totalorder %s1842_s25, %s1836_s13 }
 0x385   : > { %p1845_p13 = por %p1844_p3, %p1843_p12 }
 0x387   : > { %p1846_p0 = pnand %p1845_p13, %p1839_p9 }
 0x388   : > { %v873_v5 = vpop.xlane.xlu1 %872 }
 0x389   : > { %1686 = vrcp.f32 %v873_v5 }
 0x393   : > { %v1687_v6 = vpop.eup %1686 }
 0x394   : > { %v884_v7 = vmul.f32 %v1687_v6, %v1679_v49 }
 0x396   : > { %1528 = vmatmul.mubr.msk.f32.vlgmr.msra.gmra.mrb[4].mxu0 %vm550_vm2, %v884_v7 }
 0x397   : > { %1537 = vmatprep.mubr.msk.f32.mxu0 %vm1920_vm0, %v1921_v1 }
 0x3f1   : > { %v876_v8 = vpop.xlane.xlu0 %875 }
 0x3f2   : > { %1688 = vrcp.f32 %v876_v8 }
 0x3f5   : > { %v879_v9 = vpop.xlane.xlu1 %878 }
 0x3f6   : > { %1690 = vrcp.f32 %v879_v9 }
 0x3f9   : > { %v882_v10 = vpop.xlane.xlu0 %881  ;;  %v548_v14 = vpop.permute.xlu1 %547 }
 0x3fa   : > { %1692 = vrcp.f32 %v882_v10 }
 0x3fc   : > { %v1689_v11 = vpop.eup %1688 }
 0x3fd   : > { %v886_v12 = vmul.f32 %v1689_v11, %v1681_v61  ;;  %v545_v13 = vpop.permute.xlu0 %544 }
 0x3fe   : > { %1536 = vmatpush3.msra.mxu0 %v545_v13 }
 0x3ff   : > { %1533 = vmatmul.mubr.msk.f32.vlgmr.msra.gmra.mrb[10].mxu1 %vm550_vm2, %v886_v12  ;;  %1574 = vmatprep.subr.bf16.mxu0 %v1919_v0 }
 0x400   : > { %v1691_v15 = vpop.eup %1690  ;;  %1541 = vmatpush3.msra.mxu1 %v548_v14  ;;  %1542 = vmatprep.mubr.msk.f32.mxu1 %vm1920_vm0, %v1921_v1 }
 0x401   : > { %v888_v16 = vmul.f32 %v1691_v15, %v1683_v63 }
 0x403   : > { %1538 = vmatmul.mubr.msk.f32.vlgmr.msra.gmra.mrb[6].mxu0 %vm550_vm2, %v888_v16 }
 0x404   : > { %v1693_v17 = vpop.eup %1692  ;;  %1553 = vmatprep.mubr.msk.f32.mxu0 %vm1920_vm0, %v1921_v1  ;;  %1576 = vmatpush3.bf16.msra.mxu0 %v1575_v23 }
 0x405   : > { %v890_v18 = vmul.f32 %v1693_v17, %v1685_v3  ;;  %1577 = vmatprep.subr.bf16.mxu0 %v1919_v0 }
 0x407   : > { %1543 = vmatmul.mubr.msk.f32.vlgmr.msra.gmra.mrb[12].mxu1 %vm550_vm2, %v890_v18 }
 0x408   : > { %1579 = vmatpush3.bf16.msra.mxu0 %v1578_v26 }
 0x469   : > { %v960_v19 = vpop.f32.mrb[4].mxu0 }
 0x46a   : > { %v1529_v20 = vpop.f32.mrb[5].mxu0 }
 0x4d2   : > { %v1033_v27 = vpop.f32.mrb[10].mxu1 }
 0x4d3   : > { %1184 = vrot.lane.b32.xlu1 %v1033_v27, %s1925_s30  ;;  %v1534_v28 = vpop.f32.mrb[11].mxu1 }
 0x4d6   : > { %v1106_v1 = vpop.f32.mrb[6].mxu0 }
 0x4d7   : > { %1188 = vrot.lane.b32.xlu0 %v1106_v1, %s1926_s6  ;;  %v1539_v29 = vpop.f32.mrb[7].mxu0 }
 0x4da   : > { %v1179_v30 = vpop.f32.mrb[12].mxu1 }
 0x4db   : > { %1192 = vrot.lane.b32.xlu1 %v1179_v30, %s1927_s7  ;;  %v1544_v31 = vpop.f32.mrb[13].mxu1 }
 0x545   : > { %v1185_v32 = vpop.permute.xlu1 %1184 }
 0x546   : > { %v1195_v33 = vsel %vm550_vm2, %v960_v19, %v1185_v32 }
 0x549   : > { %v1189_v0 = vpop.permute.xlu0 %1188 }
 0x54a   : > { %v1197_v34 = vsel %vm1196_vm3, %v1195_v33, %v1189_v0 }
 0x54d   : > { %v1193_v35 = vpop.permute.xlu1 %1192 }
 0x54e   : > { %v1199_v36 = vsel %vm1198_vm4, %v1197_v34, %v1193_v35 }
 0x54f   : > { %1554 = vmatmul.mubr.msk.f32.vlgmr.msra.gmra.mrb[8].mxu0 %vm303_vm1, %v1199_v36 }
 0x622   : > { %v1273_v37 = vpop.f32.mrb[8].mxu0 }
 0x623   : > { %1277 = vst.msk [vmem:[%s297_s14] sm:$0xff] %vm303_vm1, %v1273_v37  ;;  %v1555_v38 = vpop.f32.mrb[9].mxu0 }
 0x624   : > { %1849 = shalt.err (!%p1846_p0)
}
 0x625   : > { %s1850_s28 = scalar_lea.hbm %s2288_s29, 128  ;;  %s1854_s30 = scalar_lea.hbm %s2338_s5, 256 }
 0x626   : > { %p1851_p2 = scmp.ne.s32.totalorder %s2288_s29, %s1850_s28  ;;  %p1855_p10 = scmp.lt.u32.totalorder %s2288_s29, %s2338_s5 }
 0x627   : > { %p1856_p11 = scmp.lt.u32.totalorder %s1854_s30, %s1850_s28  ;;  %p1858_p6 = scmp.lt.u32.totalorder %s1850_s28, %s2288_s29 }
 0x628   : > { %p1852_p8 = pnand %p1851_p2, %p2356_p5 }
 0x629   : > { %p1857_p1 = por %p1856_p11, %p1855_p10 }
 0x62a   : > { %p1853_p4 = pneg %p1852_p8 }
 0x62b   : > { %p1859_p7 = por %p1858_p6, %p1857_p1 }
 0x62d   : > { %p1860_p9 = pnand %p1859_p7, %p1853_p4 }
 0x62f   : > { %1863 = shalt.err (!%p1860_p9)
}
 0x630   : > { %1598 = dma.vmem_to_hbm [thread:$0]  (%p2356_p5), %s2290_s16, 128, %s2288_s29, %s1279_s8  }
 0x631 PF: > { %s1304_s10 = sand.u32 1, %s1898_s18   ;;  %p2357_p12 = scmp.ne.s32.totalorder %s2349_s12, 0 }
 0x632   : > { %p2358_p3 = scmp.ge.s32.totalorder %s1910_s21, 2  ;;  %s1305_s14 = scalar_lea.sflag [#allocation4], %s1304_s10 }
 0x634   : > { %p1618_p13 = pnand %p2358_p3, %p2357_p12 }
 0x636   : > { %1893 = dma.done.wait (!%p1618_p13), %s1305_s14, 128  }
 0x637   : > { %1895 = vsyncadd (!%p1618_p13), %s1305_s14, 4294967168  ;;  %p20_p0 = scmp.ge.s32.totalorder %s2111_s11, 4   ;;  %s2359_s18 = smov %s1902_s19 }
 0x638   : > { %s2360_s19 = smov %s1906_s20  ;;  %s2361_s20 = smov %s2122_s9 }
 0x639   : > { %s2362_s21 = smov %s2111_s11  ;;  %22 = sbr.rel (!%p20_p0) target bundleno = 7 (0x7), region = 101 }
 0x640   :  { %1310 = vsyncpa [#allocation3], 1 }
 0x641   :  { %1312 = vsyncpa [#allocation3 + $0x1], 1 }
 0x642   :  { %1313 = vsyncpa [#allocation6], 1 }
 0x643   :  { %1314 = vsyncpa [#allocation9], 1 }
 0x644   :  { %1315 = vsyncpa [#allocation4], 1 }
 0x645   :  { %1317 = vsyncpa [#allocation4 + $0x1], 1 }

// kernel: tpu_custom_call.1
= control target key start
LH: loop header
LB: loop body
LE: loop exit
PB: predicated region body
PF: predicated region fallthrough
CT: control target
= control target key end

     0   :  { %10 = vsyncpa [#allocation3], 0  ;;  %s2333_s0 = inlined_call_operand.hbm [shape: f32[2,8,32], index: 0, kind: input, shape index: {}]   ;;  %s2334_s1 = inlined_call_operand.hbm [shape: f32[32,32], index: 1, kind: input, shape index: {}]   ;;  %s2335_s2 = inlined_call_operand.hbm [shape: f32[32,32], index: 2, kind: input, shape index: {}]   ;;  %s2336_s3 = inlined_call_operand.hbm [shape: f32[32,32], index: 3, kind: input, shape index: {}]   ;;  %s2337_s4 = inlined_call_operand.hbm [shape: f32[32,32], index: 4, kind: input, shape index: {}]   ;;  %s2338_s5 = inlined_call_operand.hbm [shape: f32[2,8,32], index: 5, kind: output, shape index: {}]  }
   0x1   :  { %12 = vsyncpa [#allocation3 + $0x1], 0 }
   0x2   :  { %13 = vsyncpa [#allocation6], 0 }
   0x3   :  { %14 = vsyncpa [#allocation9], 0 }
   0x4   :  { %15 = vsyncpa [#allocation4], 0 }
   0x5   :  { %17 = vsyncpa [#allocation4 + $0x1], 0  ;;  %s1959_s18 = smov 0   ;;  %s1961_s19 = smov 0  }
   0x6   :  { %s1963_s20 = smov 0   ;;  %s1965_s21 = smov 0  }
   0x7 LB: > { %s1912_s22 = smov [#allocation5]   ;;  %s1980_s24 = sadd.s32 4294967295, %s1910_s21   ;;  %s1910_s21 = sphi %s1965_s21, %s2362_s21   ;;  %s1906_s20 = sphi %s1963_s20, %s2361_s20   ;;  %s1902_s19 = sphi %s1961_s19, %s2360_s19   ;;  %s1898_s18 = sphi %s1959_s18, %s2359_s18  }
   0x8   : > { %s176_s23 = sshll.u32 %s1912_s22, 4  ;;  %p1401_p0 = scmp.ge.s32.totalorder %s1910_s21, 1  ;;  %s1985_s23 = int_to_ptr.vmem [resolvable:$true] %s176_s23 }
   0x9   : > { %p2339_p1 = scmp.eq.s32.totalorder %s1980_s24, 0  ;;  %p164_p2 = scmp.lt.s32.totalorder %s1910_s21, 3 }
   0xa   : > { %s1913_s26 = smov [#allocation8]   ;;  %s1914_s29 = smov [#allocation7]  }
   0xb   : > { %p1987_p3 = pnand %p1401_p0, %p164_p2  ;;  %s202_s27 = sshll.u32 %s1913_s26, 4  ;;  %s2000_s27 = int_to_ptr.vmem [resolvable:$true] %s202_s27 }
   0xc   : > { %s189_s30 = sshll.u32 %s1914_s29, 4  ;;  %s1694_s8 = scalar_lea.hbm %s2334_s1, 512  ;;  %s2002_s30 = int_to_ptr.vmem [resolvable:$true] %s189_s30 }
   0xd   : > { %s2342_s25 = scalar_select %p1987_p3, 1, 0 }
   0xe   : > { %p1600_p5 = pneg %p1987_p3  ;;  %p1695_p7 = scmp.ne.s32.totalorder %s2334_s1, %s1694_s8 }
   0xf   : > { %p1701_p11 = scmp.lt.u32.totalorder %s1694_s8, %s2334_s1 }
  0x10   : > { %p1996_p6 = pnand %p1600_p5, %p2339_p1 }
  0x12   : > { %p2012_p8 = pneg %p1996_p6 }
  0x14   : > { %p1697_p9 = pnand %p2012_p8, %p1695_p7 }
  0x16   : > { %p1698_p10 = pneg %p1697_p9 }
  0x18   : > { %p1703_p12 = pnand %p1701_p11, %p1698_p10 }
  0x1a   : > { %1706 = shalt.err (!%p1703_p12)
}
  0x1b   : > { %s1707_s14 = scalar_lea.vmem %s1985_s23, 512  ;;  %p1715_p5 = scmp.lt.s32.totalorder %s1985_s23, %s1985_s23 }
  0x1c   : > { %p1708_p13 = scmp.ne.s32.totalorder %s1985_s23, %s1707_s14  ;;  %p1716_p4 = scmp.lt.s32.totalorder %s1707_s14, %s1707_s14 }
  0x1e   : > { %p1710_p0 = pnand %p1708_p13, %p2012_p8  ;;  %p1717_p7 = por %p1716_p4, %p1715_p5 }
  0x20   : > { %p1711_p2 = pneg %p1710_p0 }
  0x22   : > { %p1718_p9 = pnand %p1717_p7, %p1711_p2 }
  0x24   : > { %1721 = shalt.err (!%p1718_p9)
}
  0x25   : > { %s1915_s15 = smov 128   ;;  %s1916_s16 = smov 8  }
  0x26   : > { %1603 = dma.hbm_to_vmem [thread:$0]  (!%p1996_p6), %s2334_s1, 512, %s1985_s23, [#allocation6], %s1915_s15, %s1915_s15, %s1916_s16  }
  0x27   : > { %s1722_s6 = scalar_lea.hbm %s2336_s3, 512 }
  0x28   : > { %p1723_p4 = scmp.ne.s32.totalorder %s2336_s3, %s1722_s6  ;;  %p1729_p12 = scmp.lt.u32.totalorder %s1722_s6, %s2336_s3 }
  0x2a   : > { %p1725_p10 = pnand %p1723_p4, %p2012_p8 }
  0x2c   : > { %p1726_p11 = pneg %p1725_p10 }
  0x2e   : > { %p1731_p13 = pnand %p1729_p12, %p1726_p11 }
  0x30   : > { %1734 = shalt.err (!%p1731_p13)
}
  0x31   : > { %s1735_s23 = scalar_lea.vmem %s2000_s27, 512  ;;  %p1743_p7 = scmp.lt.s32.totalorder %s2000_s27, %s2000_s27 }
  0x32   : > { %p1736_p0 = scmp.ne.s32.totalorder %s2000_s27, %s1735_s23  ;;  %p1744_p9 = scmp.lt.s32.totalorder %s1735_s23, %s1735_s23 }
  0x34   : > { %p1738_p2 = pnand %p1736_p0, %p2012_p8  ;;  %p1745_p4 = por %p1744_p9, %p1743_p7 }
  0x36   : > { %p1739_p5 = pneg %p1738_p2 }
  0x38   : > { %p1746_p10 = pnand %p1745_p4, %p1739_p5 }
  0x3a   : > { %1749 = shalt.err (!%p1746_p10)
}
  0x3b   : > { %1609 = dma.hbm_to_vmem [thread:$0]  (!%p1996_p6), %s2336_s3, 512, %s2000_s27, [#allocation9], %s1915_s15, %s1915_s15, %s1916_s16  }
  0x3c   : > { %s1750_s22 = scalar_lea.hbm %s2335_s2, 512 }
  0x3d   : > { %p1751_p11 = scmp.ne.s32.totalorder %s2335_s2, %s1750_s22  ;;  %p1757_p0 = scmp.lt.u32.totalorder %s1750_s22, %s2335_s2 }
  0x3f   : > { %p1753_p12 = pnand %p1751_p11, %p2012_p8 }
  0x41   : > { %p1754_p13 = pneg %p1753_p12 }
  0x43   : > { %p1759_p2 = pnand %p1757_p0, %p1754_p13 }
  0x45   : > { %1762 = shalt.err (!%p1759_p2)
}
  0x46   : > { %s1763_s27 = scalar_lea.vmem %s2002_s30, 512  ;;  %p1771_p4 = scmp.lt.s32.totalorder %s2002_s30, %s2002_s30 }
  0x47   : > { %p1764_p5 = scmp.ne.s32.totalorder %s2002_s30, %s1763_s27  ;;  %p1772_p10 = scmp.lt.s32.totalorder %s1763_s27, %s1763_s27 }
  0x49   : > { %p1766_p7 = pnand %p1764_p5, %p2012_p8  ;;  %p1773_p11 = por %p1772_p10, %p1771_p4 }
  0x4b   : > { %p1767_p9 = pneg %p1766_p7 }
  0x4d   : > { %p1774_p12 = pnand %p1773_p11, %p1767_p9 }
  0x4f   : > { %1777 = shalt.err (!%p1774_p12)
}
  0x50   : > { %1606 = dma.hbm_to_vmem [thread:$0]  (!%p1996_p6), %s2335_s2, 512, %s2002_s30, [#allocation6], %s1915_s15, %s1915_s15, %s1916_s16  }
  0x51   : > { %s1917_s10 = smov [#allocation10]   ;;  %s1778_s14 = scalar_lea.hbm %s2337_s4, 512 }
  0x52   : > { %s215_s23 = sshll.u32 %s1917_s10, 4  ;;  %p1779_p13 = scmp.ne.s32.totalorder %s2337_s4, %s1778_s14  ;;  %s216_s23 = int_to_ptr.vmem [resolvable:$true] %s215_s23 }
  0x53   : > { %p1785_p5 = scmp.lt.u32.totalorder %s1778_s14, %s2337_s4 }
  0x54   : > { %p1781_p0 = pnand %p1779_p13, %p2012_p8 }
  0x56   : > { %p1782_p2 = pneg %p1781_p0 }
  0x58   : > { %p1787_p7 = pnand %p1785_p5, %p1782_p2 }
  0x5a   : > { %1790 = shalt.err (!%p1787_p7)
}
  0x5b   : > { %s1791_s30 = scalar_lea.vmem %s216_s23, 512  ;;  %p1799_p11 = scmp.lt.s32.totalorder %s216_s23, %s216_s23 }
  0x5c   : > { %p1792_p9 = scmp.ne.s32.totalorder %s216_s23, %s1791_s30  ;;  %p1800_p12 = scmp.lt.s32.totalorder %s1791_s30, %s1791_s30 }
  0x5e   : > { %p1794_p4 = pnand %p1792_p9, %p2012_p8  ;;  %p1801_p1 = por %p1800_p12, %p1799_p11 }
  0x60   : > { %p1795_p10 = pneg %p1794_p4 }
  0x62   : > { %p1802_p3 = pnand %p1801_p1, %p1795_p10 }
  0x64   : > { %1805 = shalt.err (!%p1802_p3)
}
  0x65   : > { %1612 = dma.hbm_to_vmem [thread:$0]  (!%p1996_p6), %s2337_s4, 512, %s216_s23, [#allocation9], %s1915_s15, %s1915_s15, %s1916_s16  }
  0x66   : > { %s1400_s28 = sadd.s32 4294967294, %s1910_s21   ;;  %s2111_s11 = sadd.s32 1, %s1910_s21  }
  0x67   : > { %s27_s27 = ssub.s32 %s1910_s21, %s2111_s11  ;;  %s30_s8 = sadd.s32 1, %s1906_s20 }
  0x68   : > { %p28_p1 = scmp.eq.s32.totalorder %s27_s27, 0  ;;  %p37_p3 = scmp.ne.s32.totalorder %s1906_s20, %s1902_s19 }
  0x69   : > { %p38_p8 = scmp.eq.s32.totalorder %s1910_s21, 0  ;;  %p43_p13 = scmp.ne.s32.totalorder %s1902_s19, %s1898_s18 }
  0x6a   : > { %s2122_s9 = scalar_select %p28_p1, %s1906_s20, %s30_s8  }
  0x6b   : > { %p2124_p0 = por %p38_p8, %p37_p3  ;;  %p2346_p2 = scmp.eq.s32.totalorder %s1980_s24, 0 }
  0x6c   : > { %p151_p5 = scmp.eq.s32.totalorder %s1980_s24, 1  ;;  %p157_p7 = scmp.eq.s32.totalorder %s1400_s28, 1 }
  0x6d   : > { %p2130_p6 = por %p2346_p2, %p43_p13  ;;  %p1625_p9 = scmp.lt.s32.totalorder %s1910_s21, 2 }
  0x6e   : > { %s229_s16 = sand.u32 1, %s1906_s20   ;;  %p2137_p4 = por %p151_p5, %p37_p3 }
  0x6f   : > { %p2141_p10 = por %p157_p7, %p43_p13  ;;  %s1407_s13 = sshll.u32 %s229_s16, 3 }
  0x70   : > { %s2348_s23 = scalar_select %p2137_p4, 1, 0 }
  0x71   : > { %s2349_s12 = scalar_select %p2141_p10, 1, 0 }
  0x72   : > { %s1408_s14 = sshll.u32 %s1910_s21, 7  ;;  %s233_s29 = scalar_lea.vmem [#allocation2], %s1407_s13 }
  0x73   : > { %s2149_s26 = scalar_lea.hbm %s2333_s0, %s1408_s14  ;;  %s240_s30 = sshll.u32 %s233_s29, 4  ;;  %s2151_s30 = int_to_ptr.vmem [resolvable:$true] %s240_s30 }
  0x74   : > { %p2155_p11 = pnand %p1625_p9, %p2124_p0  ;;  %s230_s7 = scalar_lea.sflag [#allocation3], %s229_s16 }
  0x75   : > { %s1806_s28 = scalar_lea.hbm %s2149_s26, 128  ;;  %s1811_s13 = scalar_lea.hbm %s2333_s0, 256 }
  0x76   : > { %p1807_p12 = scmp.ne.s32.totalorder %s2149_s26, %s1806_s28  ;;  %p1808_p1 = pneg %p2155_p11 }
  0x77   : > { %p1812_p13 = scmp.lt.u32.totalorder %s2149_s26, %s2333_s0  ;;  %p1813_p0 = scmp.lt.u32.totalorder %s1811_s13, %s1806_s28 }
  0x78   : > { %p1809_p3 = pnand %p1808_p1, %p1807_p12  ;;  %p1815_p5 = scmp.lt.u32.totalorder %s1806_s28, %s2149_s26 }
  0x79   : > { %p1814_p2 = por %p1813_p0, %p1812_p13 }
  0x7a   : > { %p1810_p8 = pneg %p1809_p3 }
  0x7b   : > { %p1816_p7 = por %p1815_p5, %p1814_p2 }
  0x7d   : > { %p1817_p9 = pnand %p1816_p7, %p1810_p8 }
  0x7f   : > { %1820 = shalt.err (!%p1817_p9)
}
  0x80   : > { %s1821_s16 = scalar_lea.vmem %s2151_s30, 128  ;;  %s1918_s17 = smov [#allocation2]  }
  0x81   : > { %p1822_p12 = scmp.ne.s32.totalorder %s2151_s30, %s1821_s16  ;;  %s1826_s22 = sshll.u32 %s1918_s17, 4  ;;  %s1827_s22 = int_to_ptr.vmem [resolvable:$false] %s1826_s22 }
  0x82   : > { %s1828_s29 = scalar_lea.vmem %s1827_s22, 256  ;;  %p1829_p4 = scmp.lt.s32.totalorder %s2151_s30, %s1827_s22 }
  0x83   : > { %p1824_p3 = pnand %p1822_p12, %p1808_p1  ;;  %p1830_p13 = scmp.lt.s32.totalorder %s1828_s29, %s1821_s16 }
  0x85   : > { %p1825_p10 = pneg %p1824_p3  ;;  %p1831_p0 = por %p1830_p13, %p1829_p4 }
  0x87   : > { %p1832_p2 = pnand %p1831_p0, %p1825_p10 }
  0x89   : > { %1835 = shalt.err (!%p1832_p2)
}
  0x8a   : > { %1616 = dma.hbm_to_vmem [thread:$0]  (!%p2155_p11), %s2149_s26, 128, %s2151_s30, %s230_s7  }
  0x8b   : > { %p2351_p8 = scmp.ne.s32.totalorder %s2342_s25, 0 }
  0x8c   : > { %s2187_s28 = sand.u32 (!%p2351_p8), 1, %s1902_s19  }
  0x8d   : > { %249 = sbr.rel (%p2351_p8) target bundleno = 1585 (0x631), region = 40  ;;  %s1410_s27 = sshll.u32 (!%p2351_p8), %s2187_s28, 3 }
  0x8e   : > { %s252_s8 = scalar_lea.sflag (!%p2351_p8), [#allocation3], %s2187_s28  ;;  %s2193_s13 = scalar_lea.vmem (!%p2351_p8), [#allocation2], %s1410_s27 }
  0x94   : > { %1881 = dma.done.wait (%p2130_p6), %s252_s8, 128  }
  0x95   : > { %1883 = vsyncadd (%p2130_p6), %s252_s8, 4294967168  ;;  %p2352_p4 = scmp.eq.s32.totalorder %s1980_s24, 0 }
  0x97   : > { %1885 = dma.done.wait (%p2352_p4), [#allocation6], 1024   ;;  %p2353_p10 = pmov %p2352_p4 }
  0x98   : > { %p2354_p11 = pmov %p2352_p4 }
  0x99   : > { %1887 = vsyncadd (%p2353_p10), [#allocation6], 4294966272 }
  0x9a   : > { %1889 = dma.done.wait (%p2354_p11), [#allocation9], 1024   ;;  %p2355_p1 = pmov %p2352_p4 }
  0x9b   : > { %v1919_v0 = vmov 0.0|0.0   ;;  %vm1920_vm0 = vmmov 0   ;;  %v1921_v1 = vmov 0.0   ;;  %v378_v2 = vld [vmem:[#allocation7] sm:$0xff]  ;;  %v379_v3 = vld [vmem:[#allocation7 + $0x8] sm:$0xff]  ;;  %v380_v7 = vld [vmem:[#allocation7 + $0x10] sm:$0xff] }
  0x9c   : > { %1891 = vsyncadd (%p2355_p1), [#allocation9], 4294966272  ;;  %1562 = vmatprep.subr.bf16.mxu1 %v1919_v0  ;;  %1556 = vmatprep.subr.bf16.mxu0 %v1919_v0  ;;  %v299_v4 = vld [vmem:[#allocation5] sm:$0xff]  ;;  %v1563_v5 = vpack.c.bf16 %v379_v3, %v378_v2  ;;  %v300_v6 = vld [vmem:[#allocation5 + $0x8] sm:$0xff]  ;;  %vm303_vm1 = vcmask 261120   ;;  %vm550_vm2 = vcmask 64512  }
  0x9d   : > { %1491 = vmatprep.mubr.msk.f32.mxu1 %vm1920_vm0, %v1921_v1  ;;  %1480 = vmatprep.mubr.msk.f32.mxu0 %vm1920_vm0, %v1921_v1  ;;  %v381_v8 = vld [vmem:[#allocation7 + $0x18] sm:$0xff]  ;;  %v1557_v9 = vpack.c.bf16 %v300_v6, %v299_v4  ;;  %v301_v10 = vld [vmem:[#allocation5 + $0x10] sm:$0xff]  ;;  %s1922_s25 = smov 112   ;;  %s1923_s15 = smov 120   ;;  %v452_v18 = vld [vmem:[#allocation8] sm:$0xff]  ;;  %vm1196_vm3 = vcmask 130048  }
  0x9e   : > { %v302_v11 = vld [vmem:[#allocation5 + $0x18] sm:$0xff]  ;;  %1564 = vmatpush3.bf16.msra.mxu1 %v1563_v5  ;;  %v1566_v12 = vpack.c.bf16 %v381_v8, %v380_v7  ;;  %v453_v19 = vld [vmem:[#allocation8 + $0x8] sm:$0xff]  ;;  %v454_v20 = vld [vmem:[#allocation8 + $0x10] sm:$0xff]  ;;  %s1924_s26 = smov 104   ;;  %s1925_s30 = smov 8   ;;  %vm1198_vm4 = vcmask 195584  }
  0x9f   : > { %1558 = vmatpush3.bf16.msra.mxu0 %v1557_v9  ;;  %1565 = vmatprep.subr.bf16.mxu1 %v1919_v0  ;;  %v1560_v13 = vpack.c.bf16 %v302_v11, %v301_v10  ;;  %v298_v14 = vld [vmem:[%s2193_s13] sm:$0xff]  ;;  %v1569_v23 = vpack.c.bf16 %v453_v19, %v452_v18  ;;  %s1926_s6 = smov 16   ;;  %s1927_s7 = smov 24  }
  0xa0   : > { %1559 = vmatprep.subr.bf16.mxu0 %v1919_v0  ;;  %v455_v24 = vld [vmem:[#allocation8 + $0x18] sm:$0xff]  ;;  %s1433_s10 = sshll.u32 %s1980_s24, 7  ;;  %s297_s14 = scalar_lea.vmem [#allocation11], %s1410_s27 }
  0xa1   : > { %v1572_v25 = vpack.c.bf16 %v455_v24, %v454_v20  ;;  %v1202_v24 = vld [vmem:[#allocation10 + $0x10] sm:$0xff]  ;;  %s1292_s16 = sshll.u32 %s297_s14, 4  ;;  %s2288_s29 = scalar_lea.hbm %s2338_s5, %s1433_s10  ;;  %s2290_s16 = int_to_ptr.vmem [resolvable:$true] %s1292_s16 }
  0xa2   : > { %1567 = vmatpush3.bf16.msra.mxu1 %v1566_v12  ;;  %s1279_s8 = scalar_lea.sflag [#allocation4], %s2187_s28  ;;  %s1836_s13 = scalar_lea.vmem %s2290_s16, 128 }
  0xa3   : > { %1561 = vmatpush3.bf16.msra.mxu0 %v1560_v13  ;;  %1505 = vmatprep.subr.mxu1 %v1921_v1  ;;  %p1837_p6 = scmp.ne.s32.totalorder %s2290_s16, %s1836_s13  ;;  %p2356_p5 = scmp.ne.s32.totalorder %s2348_s23, 0 }
  0xa4   : > { %1568 = vmatprep.subr.bf16.mxu0 %v1919_v0  ;;  %s1928_s24 = smov [#allocation11]  }
  0xa5   : > { %1492 = vmatmul.mubr.msk.f32.vlgmr.msra.gmra.mrb[0].mxu1 %vm303_vm1, %v298_v14  ;;  %p1838_p7 = pnand %p1837_p6, %p2356_p5  ;;  %s1840_s27 = sshll.u32 %s1928_s24, 4  ;;  %s1841_s27 = int_to_ptr.vmem [resolvable:$false] %s1840_s27 }
  0xa6   : > { %1481 = vmatmul.mubr.msk.f32.vlgmr.msra.gmra.mrb[0].mxu0 %vm303_vm1, %v298_v14  ;;  %1507 = vmatprep.mubr.msk.f32.mxu1 %vm1920_vm0, %v1921_v1  ;;  %p1843_p12 = scmp.lt.s32.totalorder %s2290_s16, %s1841_s27 }
  0xa7   : > { %1502 = vmatprep.mubr.msk.f32.mxu0 %vm1920_vm0, %v1921_v1  ;;  %1570 = vmatpush3.bf16.msra.mxu0 %v1569_v23  ;;  %p1839_p9 = pneg %p1838_p7 }
  0xa8   : > { %1571 = vmatprep.subr.bf16.mxu0 %v1919_v0 }
  0xab   : > { %1573 = vmatpush3.bf16.msra.mxu0 %v1572_v25  ;;  %v1203_v25 = vld [vmem:[#allocation10 + $0x18] sm:$0xff] }
  0xac   : > { %1525 = vmatprep.subr.mxu0 %v1921_v1 }
  0xae   : > { %1503 = vmatmul.mubr.msk.f32.vlgmr.msra.gmra.mrb[2].mxu0 %vm303_vm1, %v298_v14 }
  0xaf   : > { %1527 = vmatprep.mubr.msk.f32.mxu0 %vm1920_vm0, %v1921_v1 }
 0x178   : > { %v448_v15 = vpop.f32.mrb[0].mxu1 }
 0x179   : > { %536 = vrot.lane.b32.xlu1 %v448_v15, %s1922_s25  ;;  %534 = vrot.lane.b32.xlu0 %v448_v15, %s1923_s15  ;;  %v373_v16 = vpop.f32.mrb[0].mxu0  ;;  %v1493_v17 = vpop.f32.mrb[1].mxu1 }
 0x17a   : > { %v377_v21 = vmul.f32 0.35355338, %v373_v16  ;;  %1506 = vmatpush3.xpose.msk.msra.mxu1 %vm550_vm2, %v448_v15  ;;  %v1482_v22 = vpop.f32.mrb[1].mxu0 }
 0x17b   : > { %1510 = vmatprep.subr.mxu1 %v1921_v1  ;;  %v1201_v22 = vld [vmem:[#allocation10 + $0x8] sm:$0xff] }
 0x17d   : > { %1508 = vmatmul.mubr.msk.f32.vlgmr.msra.gmra.mrb[2].mxu1 %vm550_vm2, %v377_v21  ;;  %529 = vrot.lane.b32.xlu1 %v377_v21, %s1922_s25 }
 0x17e   : > { %527 = vrot.lane.b32.xlu0 %v377_v21, %s1923_s15  ;;  %1512 = vmatprep.mubr.msk.f32.mxu1 %vm1920_vm0, %v1921_v1 }
 0x181   : > { %531 = vrot.lane.b32.xlu1 %v377_v21, %s1924_s26  ;;  %v522_v35 = vpop.f32.mrb[2].mxu0  ;;  %v1200_v21 = vld [vmem:[#allocation10] sm:$0xff] }
 0x182   : > { %538 = vrot.lane.b32.xlu0 %v448_v15, %s1924_s26  ;;  %v1504_v36 = vpop.f32.mrb[3].mxu0  ;;  %1526 = vmatpush3.msra.mxu0 %v522_v35  ;;  %v1575_v23 = vpack.c.bf16 %v1201_v22, %v1200_v21 }
 0x183   : > { %1535 = vmatprep.subr.mxu0 %v1921_v1 }
 0x1eb   : > { %v535_v26 = vpop.permute.xlu0 %534  ;;  %v537_v27 = vpop.permute.xlu1 %536 }
 0x1ec   : > { %1511 = vmatpush3.xpose.msk.msra.mxu1 %vm550_vm2, %v535_v26  ;;  %v1578_v26 = vpack.c.bf16 %v1203_v25, %v1202_v24 }
 0x1ed   : > { %1515 = vmatprep.subr.mxu1 %v1921_v1 }
 0x1ef   : > { %v530_v29 = vpop.permute.xlu1 %529 }
 0x1f0   : > { %v528_v28 = vpop.permute.xlu0 %527 }
 0x1f1   : > { %1513 = vmatmul.mubr.msk.f32.vlgmr.msra.gmra.mrb[4].mxu1 %vm550_vm2, %v528_v28 }
 0x1f2   : > { %1516 = vmatpush3.xpose.msk.msra.mxu1 %vm550_vm2, %v537_v27  ;;  %1517 = vmatprep.mubr.msk.f32.mxu1 %vm1920_vm0, %v1921_v1 }
 0x1f3   : > { %1520 = vmatprep.subr.mxu1 %v1921_v1  ;;  %v532_v31 = vpop.permute.xlu1 %531 }
 0x1f4   : > { %v539_v30 = vpop.permute.xlu0 %538 }
 0x1f5   : > { %1518 = vmatmul.mubr.msk.f32.vlgmr.msra.gmra.mrb[6].mxu1 %vm550_vm2, %v530_v29 }
 0x1f6   : > { %1521 = vmatpush3.xpose.msk.msra.mxu1 %vm550_vm2, %v539_v30  ;;  %1522 = vmatprep.mubr.msk.f32.mxu1 %vm1920_vm0, %v1921_v1 }
 0x1f7   : > { %1530 = vmatprep.subr.mxu1 %v1921_v1 }
 0x1f9   : > { %1523 = vmatmul.mubr.msk.f32.vlgmr.msra.gmra.mrb[8].mxu1 %vm550_vm2, %v532_v31 }
 0x1fa   : > { %1532 = vmatprep.mubr.msk.f32.mxu1 %vm1920_vm0, %v1921_v1 }
 0x250   : > { %v621_v32 = vpop.f32.mrb[2].mxu1 }
 0x251   : > { %v1509_v33 = vpop.f32.mrb[3].mxu1  ;;  %v847_v34 = vsel %vm550_vm2, %v621_v32, -inf }
 0x252   : > { %848 = vmax.xlane.f32.xlu0 %v847_v34 }
 0x2c4   : > { %v695_v37 = vpop.f32.mrb[4].mxu1 }
 0x2c5   : > { %v1514_v38 = vpop.f32.mrb[5].mxu1  ;;  %v850_v39 = vsel %vm550_vm2, %v695_v37, -inf }
 0x2c6   : > { %851 = vmax.xlane.f32.xlu1 %v850_v39 }
 0x2c8   : > { %v769_v40 = vpop.f32.mrb[6].mxu1 }
 0x2c9   : > { %v1519_v41 = vpop.f32.mrb[7].mxu1  ;;  %v853_v42 = vsel %vm550_vm2, %v769_v40, -inf }
 0x2ca   : > { %854 = vmax.xlane.f32.xlu0 %v853_v42 }
 0x2cc   : > { %v843_v43 = vpop.f32.mrb[8].mxu1 }
 0x2cd   : > { %v1524_v44 = vpop.f32.mrb[9].mxu1  ;;  %v856_v45 = vsel %vm550_vm2, %v843_v43, -inf }
 0x2ce   : > { %857 = vmax.xlane.f32.xlu0 %v856_v45 }
 0x2d7   : > { %541 = vrot.lane.b32.xlu1 %v522_v35, %s1923_s15 }
 0x2df   : > { %v849_v46 = vpop.xlane.xlu0 %848 }
 0x2e0   : > { %v859_v47 = vsub.f32 %v621_v32, %v849_v46 }
 0x2e2   : > { %v863_v48 = vmul.f32 1.442695, %v859_v47 }
 0x2e4   : > { %1678 = vpow2.f32 %v863_v48 }
 0x2ee   : > { %v1679_v49 = vpop.eup %1678 }
 0x2ef   : > { %v871_v50 = vsel %vm550_vm2, %v1679_v49, 0.0 }
 0x2fb   : > { %872 = vadd.xlane.f32.xlu1 %v871_v50 }
 0x353   : > { %v852_v51 = vpop.xlane.xlu1 %851 }
 0x354   : > { %v860_v52 = vsub.f32 %v695_v37, %v852_v51 }
 0x356   : > { %v865_v53 = vmul.f32 1.442695, %v860_v52 }
 0x357   : > { %v855_v54 = vpop.xlane.xlu0 %854  ;;  %v542_v55 = vpop.permute.xlu1 %541 }
 0x358   : > { %1680 = vpow2.f32 %v865_v53  ;;  %v861_v56 = vsub.f32 %v769_v40, %v855_v54  ;;  %1531 = vmatpush3.msra.mxu1 %v542_v55 }
 0x359   : > { %1540 = vmatprep.subr.mxu1 %v1921_v1 }
 0x35a   : > { %v867_v57 = vmul.f32 1.442695, %v861_v56 }
 0x35b   : > { %v858_v58 = vpop.xlane.xlu0 %857 }
 0x35c   : > { %1682 = vpow2.f32 %v867_v57  ;;  %v862_v59 = vsub.f32 %v843_v43, %v858_v58 }
 0x35e   : > { %v869_v60 = vmul.f32 1.442695, %v862_v59 }
 0x360   : > { %1684 = vpow2.f32 %v869_v60 }
 0x362   : > { %v1681_v61 = vpop.eup %1680 }
 0x363   : > { %v874_v62 = vsel %vm550_vm2, %v1681_v61, 0.0 }
 0x364   : > { %875 = vadd.xlane.f32.xlu0 %v874_v62 }
 0x366   : > { %v1683_v63 = vpop.eup %1682 }
 0x367   : > { %v877_v2 = vsel %vm550_vm2, %v1683_v63, 0.0 }
 0x368   : > { %878 = vadd.xlane.f32.xlu1 %v877_v2 }
 0x36a   : > { %v1685_v3 = vpop.eup %1684 }
 0x36b   : > { %v880_v4 = vsel %vm550_vm2, %v1685_v3, 0.0 }
 0x36c   : > { %881 = vadd.xlane.f32.xlu0 %v880_v4 }
 0x379   : > { %547 = vrot.lane.b32.xlu1 %v522_v35, %s1924_s26 }
 0x382   : > { %544 = vrot.lane.b32.xlu0 %v522_v35, %s1922_s25  ;;  %s1842_s25 = scalar_lea.vmem %s1841_s27, 256 }
 0x383   : > { %p1844_p3 = scmp.lt.s32.totalorder %s1842_s25, %s1836_s13 }
 0x385   : > { %p1845_p13 = por %p1844_p3, %p1843_p12 }
 0x387   : > { %p1846_p0 = pnand %p1845_p13, %p1839_p9 }
 0x388   : > { %v873_v5 = vpop.xlane.xlu1 %872 }
 0x389   : > { %1686 = vrcp.f32 %v873_v5 }
 0x393   : > { %v1687_v6 = vpop.eup %1686 }
 0x394   : > { %v884_v7 = vmul.f32 %v1687_v6, %v1679_v49 }
 0x396   : > { %1528 = vmatmul.mubr.msk.f32.vlgmr.msra.gmra.mrb[4].mxu0 %vm550_vm2, %v884_v7 }
 0x397   : > { %1537 = vmatprep.mubr.msk.f32.mxu0 %vm1920_vm0, %v1921_v1 }
 0x3f1   : > { %v876_v8 = vpop.xlane.xlu0 %875 }
 0x3f2   : > { %1688 = vrcp.f32 %v876_v8 }
 0x3f5   : > { %v879_v9 = vpop.xlane.xlu1 %878 }
 0x3f6   : > { %1690 = vrcp.f32 %v879_v9 }
 0x3f9   : > { %v882_v10 = vpop.xlane.xlu0 %881  ;;  %v548_v14 = vpop.permute.xlu1 %547 }
 0x3fa   : > { %1692 = vrcp.f32 %v882_v10 }
 0x3fc   : > { %v1689_v11 = vpop.eup %1688 }
 0x3fd   : > { %v886_v12 = vmul.f32 %v1689_v11, %v1681_v61  ;;  %v545_v13 = vpop.permute.xlu0 %544 }
 0x3fe   : > { %1536 = vmatpush3.msra.mxu0 %v545_v13 }
 0x3ff   : > { %1533 = vmatmul.mubr.msk.f32.vlgmr.msra.gmra.mrb[10].mxu1 %vm550_vm2, %v886_v12  ;;  %1574 = vmatprep.subr.bf16.mxu0 %v1919_v0 }
 0x400   : > { %v1691_v15 = vpop.eup %1690  ;;  %1541 = vmatpush3.msra.mxu1 %v548_v14  ;;  %1542 = vmatprep.mubr.msk.f32.mxu1 %vm1920_vm0, %v1921_v1 }
 0x401   : > { %v888_v16 = vmul.f32 %v1691_v15, %v1683_v63 }
 0x403   : > { %1538 = vmatmul.mubr.msk.f32.vlgmr.msra.gmra.mrb[6].mxu0 %vm550_vm2, %v888_v16 }
 0x404   : > { %v1693_v17 = vpop.eup %1692  ;;  %1553 = vmatprep.mubr.msk.f32.mxu0 %vm1920_vm0, %v1921_v1  ;;  %1576 = vmatpush3.bf16.msra.mxu0 %v1575_v23 }
 0x405   : > { %v890_v18 = vmul.f32 %v1693_v17, %v1685_v3  ;;  %1577 = vmatprep.subr.bf16.mxu0 %v1919_v0 }
 0x407   : > { %1543 = vmatmul.mubr.msk.f32.vlgmr.msra.gmra.mrb[12].mxu1 %vm550_vm2, %v890_v18 }
 0x408   : > { %1579 = vmatpush3.bf16.msra.mxu0 %v1578_v26 }
 0x469   : > { %v960_v19 = vpop.f32.mrb[4].mxu0 }
 0x46a   : > { %v1529_v20 = vpop.f32.mrb[5].mxu0 }
 0x4d2   : > { %v1033_v27 = vpop.f32.mrb[10].mxu1 }
 0x4d3   : > { %1184 = vrot.lane.b32.xlu1 %v1033_v27, %s1925_s30  ;;  %v1534_v28 = vpop.f32.mrb[11].mxu1 }
 0x4d6   : > { %v1106_v1 = vpop.f32.mrb[6].mxu0 }
 0x4d7   : > { %1188 = vrot.lane.b32.xlu0 %v1106_v1, %s1926_s6  ;;  %v1539_v29 = vpop.f32.mrb[7].mxu0 }
 0x4da   : > { %v1179_v30 = vpop.f32.mrb[12].mxu1 }
 0x4db   : > { %1192 = vrot.lane.b32.xlu1 %v1179_v30, %s1927_s7  ;;  %v1544_v31 = vpop.f32.mrb[13].mxu1 }
 0x545   : > { %v1185_v32 = vpop.permute.xlu1 %1184 }
 0x546   : > { %v1195_v33 = vsel %vm550_vm2, %v960_v19, %v1185_v32 }
 0x549   : > { %v1189_v0 = vpop.permute.xlu0 %1188 }
 0x54a   : > { %v1197_v34 = vsel %vm1196_vm3, %v1195_v33, %v1189_v0 }
 0x54d   : > { %v1193_v35 = vpop.permute.xlu1 %1192 }
 0x54e   : > { %v1199_v36 = vsel %vm1198_vm4, %v1197_v34, %v1193_v35 }
 0x54f   : > { %1554 = vmatmul.mubr.msk.f32.vlgmr.msra.gmra.mrb[8].mxu0 %vm303_vm1, %v1199_v36 }
 0x622   : > { %v1273_v37 = vpop.f32.mrb[8].mxu0 }
 0x623   : > { %1277 = vst.msk [vmem:[%s297_s14] sm:$0xff] %vm303_vm1, %v1273_v37  ;;  %v1555_v38 = vpop.f32.mrb[9].mxu0 }
 0x624   : > { %1849 = shalt.err (!%p1846_p0)
}
 0x625   : > { %s1850_s28 = scalar_lea.hbm %s2288_s29, 128  ;;  %s1854_s30 = scalar_lea.hbm %s2338_s5, 256 }
 0x626   : > { %p1851_p2 = scmp.ne.s32.totalorder %s2288_s29, %s1850_s28  ;;  %p1855_p10 = scmp.lt.u32.totalorder %s2288_s29, %s2338_s5 }
 0x627   : > { %p1856_p11 = scmp.lt.u32.totalorder %s1854_s30, %s1850_s28  ;;  %p1858_p6 = scmp.lt.u32.totalorder %s1850_s28, %s2288_s29 }
 0x628   : > { %p1852_p8 = pnand %p1851_p2, %p2356_p5 }
 0x629   : > { %p1857_p1 = por %p1856_p11, %p1855_p10 }
 0x62a   : > { %p1853_p4 = pneg %p1852_p8 }
 0x62b   : > { %p1859_p7 = por %p1858_p6, %p1857_p1 }
 0x62d   : > { %p1860_p9 = pnand %p1859_p7, %p1853_p4 }
 0x62f   : > { %1863 = shalt.err (!%p1860_p9)
}
 0x630   : > { %1598 = dma.vmem_to_hbm [thread:$0]  (%p2356_p5), %s2290_s16, 128, %s2288_s29, %s1279_s8  }
 0x631 PF: > { %s1304_s10 = sand.u32 1, %s1898_s18   ;;  %p2357_p12 = scmp.ne.s32.totalorder %s2349_s12, 0 }
 0x632   : > { %p2358_p3 = scmp.ge.s32.totalorder %s1910_s21, 2  ;;  %s1305_s14 = scalar_lea.sflag [#allocation4], %s1304_s10 }
 0x634   : > { %p1618_p13 = pnand %p2358_p3, %p2357_p12 }
 0x636   : > { %1893 = dma.done.wait (!%p1618_p13), %s1305_s14, 128  }
 0x637   : > { %1895 = vsyncadd (!%p1618_p13), %s1305_s14, 4294967168  ;;  %p20_p0 = scmp.ge.s32.totalorder %s2111_s11, 4   ;;  %s2359_s18 = smov %s1902_s19 }
 0x638   : > { %s2360_s19 = smov %s1906_s20  ;;  %s2361_s20 = smov %s2122_s9 }
 0x639   : > { %s2362_s21 = smov %s2111_s11  ;;  %22 = sbr.rel (!%p20_p0) target bundleno = 7 (0x7), region = 101 }
 0x640   :  { %1310 = vsyncpa [#allocation3], 1 }
 0x641   :  { %1312 = vsyncpa [#allocation3 + $0x1], 1 }
 0x642   :  { %1313 = vsyncpa [#allocation6], 1 }
 0x643   :  { %1314 = vsyncpa [#allocation9], 1 }
 0x644   :  { %1315 = vsyncpa [#allocation4], 1 }
 0x645   :  { %1317 = vsyncpa [#allocation4 + $0x1], 1 }

</bundles_post_ra>
